<compile_context>
chip_gen: v6e
topology: v6e:2x2x1
jax: 0.10.0
libtpu: 0.0.40
codegen_flags: <defaults>
</compile_context>

<pallas_src>
import math
from functools import partial

import jax
import jax.numpy as jnp
import numpy as np
from jax.experimental import pallas as pl
from jax.experimental.pallas import tpu as pltpu


def _layer_norm(v, eps=1e-6):
    mu = jnp.mean(v, axis=-1, keepdims=True)
    var = jnp.mean((v - mu) ** 2, axis=-1, keepdims=True)
    return (v - mu) * jax.lax.rsqrt(var + eps)


# ----------------------------------------------------------------------------
# Pallas kernel: one (batch, Lx-tile) per grid step.
# K/V (already projected, K pre-transposed) arrive as inputs; only the query
# projection, attention, output projection and MLP run inside the kernel.
# ----------------------------------------------------------------------------
def _cross_dit_kernel(
        x_ref, kt_ref, v_ref,
        shift_mca_x_ref, scale_mca_x_ref, gate_mca_x_ref,
        shift_mlp_x_ref, scale_mlp_x_ref, gate_mlp_x_ref,
        wq_ref, bq_ref, wo_ref, bo_ref, w1_ref, b1_ref, w2_ref, b2_ref,
        out_ref,
        attn_scratch,
        *, num_head):
    f32 = jnp.float32
    bf16 = jnp.bfloat16

    x = x_ref[0].astype(f32)                     # (TILE_M, Dx)
    Dx = x.shape[-1]
    dh = Dx // num_head

    # Per-batch modulation vectors (precomputed in the wrapper), each (1, Dx).
    shift_mca_x = shift_mca_x_ref[0]
    scale_mca_x = scale_mca_x_ref[0]
    gate_mca_x = gate_mca_x_ref[0]
    shift_mlp_x = shift_mlp_x_ref[0]
    scale_mlp_x = scale_mlp_x_ref[0]
    gate_mlp_x = gate_mlp_x_ref[0]

    # --- query projection (1/sqrt(dh) pre-folded into wq / bq) ---
    x_n1 = _layer_norm(x) * (1.0 + scale_mca_x) + shift_mca_x      # (TILE_M, Dx)
    q = jnp.dot(x_n1.astype(bf16), wq_ref[...],
                preferred_element_type=f32) + bq_ref[...]
    q_b = q.astype(bf16)

    kt = kt_ref[0]                               # (Dx, Ly) bf16, pre-transposed
    v = v_ref[0]                                 # (Ly, Dx) bf16

    # --- per-head attention (no in-kernel transpose; bf16 scratch writes) ---
    for h in range(num_head):                    # static unroll (small num_head)
        lo, hi = h * dh, (h + 1) * dh
        s = jnp.dot(q_b[:, lo:hi], kt[lo:hi, :],
                    preferred_element_type=f32)                     # (TILE_M, Ly)
        s = s - jnp.max(s, axis=-1, keepdims=True)
        p = jnp.exp(s)
        p = p * pl.reciprocal(jnp.sum(p, axis=-1, keepdims=True), approx=True)
        attn_scratch[:, lo:hi] = jnp.dot(
            p.astype(bf16), v[:, lo:hi],
            preferred_element_type=f32).astype(bf16)

    attn = jnp.dot(attn_scratch[...], wo_ref[...],
                   preferred_element_type=f32) + bo_ref[...]        # (TILE_M, Dx)

    x = x + gate_mca_x * attn

    # --- MLP branch ---
    x_n3 = _layer_norm(x) * (1.0 + scale_mlp_x) + shift_mlp_x
    h1 = jnp.dot(x_n3.astype(bf16), w1_ref[...],
                 preferred_element_type=f32) + b1_ref[...]          # (TILE_M, H)
    # GELU(approximate='tanh'); tanh runs on the EUP slot.
    g = 0.5 * h1 * (1.0 + jnp.tanh(0.7978845608028654 *
                                   (h1 + 0.044715 * h1 * h1 * h1)))
    mlp = jnp.dot(g.astype(bf16), w2_ref[...],
                  preferred_element_type=f32) + b2_ref[...]         # (TILE_M, Dx)

    out_ref[0] = (x + gate_mlp_x * mlp).astype(out_ref.dtype)


# ----------------------------------------------------------------------------
# Host-side parameter prep.
# ----------------------------------------------------------------------------
def prepare_params(params, num_head):
    Dx = params["wq"].shape[0]
    Dy = params["wk"].shape[0]
    dh = Dx // num_head
    scale = 1.0 / math.sqrt(dh)
    bf16 = jnp.bfloat16
    bq, bk, bv = jnp.split(params["b_qkv"][0], 3)
    return {
        # adaLN stays host-side (tiny matmuls); only the 2 used y chunks kept.
        "w_adaln_x": params["w_adaln_x"],
        "b_adaln_x": params["b_adaln_x"],
        "w_adaln_y2": params["w_adaln_y"][:, : 2 * Dy],
        "b_adaln_y2": params["b_adaln_y"][:, : 2 * Dy],
        # K/V projection is hoisted to the wrapper (once per batch, in XLA).
        "wk": params["wk"], "wv": params["wv"], "bk": bk, "bv": bv,
        # in-kernel attention weights (1/sqrt(dh) folded into q projection)
        "wq": (params["wq"] * scale).astype(bf16),
        "bq": (bq * scale).reshape(1, Dx).astype(jnp.float32),
        "wo": params["wo"].astype(bf16),
        "bo": params["bo"],
        # MLP
        "w1": params["w1"].astype(bf16),
        "b1": params["b1"],
        "w2": params["w2"].astype(bf16),
        "b2": params["b2"],
    }


def _vmem_capacity_bytes():
    try:
        return int(pltpu.get_tpu_info().vmem_capacity_bytes)
    except Exception:
        return 64 << 20  # conservative (v7x-sized) default


def _pick_tile_m(Lx, B):
    # Generation-aware cap: 256 on 64 MiB VMEM parts (v7x), 512 otherwise.
    cap = 256 if _vmem_capacity_bytes() <= (64 << 20) else 512
    tile = Lx
    for t in (512, 256, 128, 64, 32, 16, 8):
        if t <= cap and Lx % t == 0:
            tile = t
            break
    # Expose >= 2 parallel grid points for the 2 TensorCores on v7x if possible.
    if B * (Lx // tile) < 2 and tile % 16 == 0:
        tile //= 2
    return tile


# ----------------------------------------------------------------------------
# Wrapper
# ----------------------------------------------------------------------------
def cross_dit_block(x, c, y, prepped, num_head):
    B, Lx, Dx = x.shape
    _, Ly, Dy = y.shape
    H = prepped["w1"].shape[1]
    bf16 = jnp.bfloat16

    # ---- adaLN modulation in plain JAX (tiny; keeps weights out of VMEM) ----
    silu_c = c * jax.nn.sigmoid(c)                                   # (B, Dx)
    mod_x = silu_c @ prepped["w_adaln_x"] + prepped["b_adaln_x"]     # (B, 6Dx)
    mod_y = silu_c @ prepped["w_adaln_y2"] + prepped["b_adaln_y2"]   # (B, 2Dy)
    mods = [m.reshape(B, 1, Dx) for m in jnp.split(mod_x, 6, axis=-1)]
    shift_mca_y, scale_mca_y = jnp.split(mod_y, 2, axis=-1)

    # ---- y LayerNorm + modulation + K/V projection hoisted out of the grid ----
    y_n2 = (_layer_norm(y) * (1.0 + scale_mca_y[:, None, :])
            + shift_mca_y[:, None, :])                               # (B, Ly, Dy)
    k = y_n2 @ prepped["wk"] + prepped["bk"]                         # (B, Ly, Dx)
    v = y_n2 @ prepped["wv"] + prepped["bv"]                         # (B, Ly, Dx)
    kt = jnp.swapaxes(k, 1, 2).astype(bf16)     # (B, Dx, Ly): no in-kernel k.T
    v = v.astype(bf16)

    weights = [prepped[n] for n in
               ("wq", "bq", "wo", "bo", "w1", "b1", "w2", "b2")]

    TILE_M = _pick_tile_m(Lx, B)
    n_m = Lx // TILE_M

    # ---- cost estimate (scheduler hint) ----
    flops = 2 * B * Lx * (2 * Dx * Dx + 2 * Ly * Dx + 2 * Dx * H)
    transcendentals = B * Lx * (num_head * Ly + H)
    w_bytes = sum(int(np.prod(w.shape)) * w.dtype.itemsize for w in weights)
    bytes_accessed = int(2 * x.size * x.dtype.itemsize            # x in + out
                         + kt.size * 2 + v.size * 2
                         + w_bytes + 6 * B * Dx * 4)
    cost = pl.CostEstimate(flops=flops, transcendentals=transcendentals,
                           bytes_accessed=bytes_accessed)

    # ---- explicit VMEM budget ----
    kv_bytes = 2 * 2 * Ly * Dx * 2                 # kt + v, double-buffered bf16
    io_bytes = 2 * 2 * TILE_M * Dx * x.dtype.itemsize
    scratch_bytes = TILE_M * Dx * 2
    interm_bytes = 4 * TILE_M * max(H, Ly, Dx) * 4
    need = 2 * w_bytes + kv_bytes + io_bytes + scratch_bytes + interm_bytes + (4 << 20)
    vmem_limit = int(min(64 << 20, max(32 << 20, need)))

    x_spec = pl.BlockSpec((1, TILE_M, Dx), lambda b, m: (b, m, 0))
    kt_spec = pl.BlockSpec((1, Dx, Ly), lambda b, m: (b, 0, 0))
    v_spec = pl.BlockSpec((1, Ly, Dx), lambda b, m: (b, 0, 0))
    mod_specs = [pl.BlockSpec((1, 1, Dx), lambda b, m: (b, 0, 0)) for _ in mods]
    out_spec = pl.BlockSpec((1, TILE_M, Dx), lambda b, m: (b, m, 0))

    def _run(single_buffer_weights):
        if single_buffer_weights:
            # Grid-invariant weights: single-buffer (double-buffering them is
            # pure VMEM waste since the block index never changes).
            w_specs = [pl.BlockSpec(w.shape, lambda b, m: (0, 0),
                                    pipeline_mode=pl.Buffered(1))
                       for w in weights]
        else:
            w_specs = [pl.BlockSpec(w.shape, lambda b, m: (0, 0)) for w in weights]
        return pl.pallas_call(
            partial(_cross_dit_kernel, num_head=num_head),
            out_shape=jax.ShapeDtypeStruct((B, Lx, Dx), x.dtype),
            grid_spec=pltpu.PrefetchScalarGridSpec(
                num_scalar_prefetch=0,
                grid=(B, n_m),
                in_specs=[x_spec, kt_spec, v_spec] + mod_specs + w_specs,
                out_specs=out_spec,
                scratch_shapes=[pltpu.VMEM((TILE_M, Dx), jnp.bfloat16)],
            ),
            compiler_params=pltpu.CompilerParams(
                dimension_semantics=("parallel", "parallel"),
                vmem_limit_bytes=vmem_limit),
            cost_estimate=cost,
        )(x, kt, v, *mods, *weights)

    try:
        return _run(True)
    except Exception:
        # Fallback if this jax build rejects pipeline_mode=pl.Buffered(1).
        return _run(False)


# ----------------------------------------------------------------------------
# Pure-JAX f32 reference (mirrors the PyTorch forward) for a correctness check.
# ----------------------------------------------------------------------------
def cross_dit_block_ref(x, c, y, params, num_head):
    eps = 1e-6
    B, Lx, Dx = x.shape
    _, Ly, Dy = y.shape
    dh = Dx // num_head

    def ln(v):
        mu = jnp.mean(v, axis=-1, keepdims=True)
        var = jnp.mean((v - mu) ** 2, axis=-1, keepdims=True)
        return (v - mu) / jnp.sqrt(var + eps)

    silu_c = c * jax.nn.sigmoid(c)
    mod_x = silu_c @ params["w_adaln_x"] + params["b_adaln_x"][0]
    mod_y = silu_c @ params["w_adaln_y"] + params["b_adaln_y"][0]
    smx, scx, gmx, smlx, sclx, glx = jnp.split(mod_x, 6, axis=-1)
    smy, scy = jnp.split(mod_y, 6, axis=-1)[:2]

    x_n1 = ln(x) * (1 + scx[:, None, :]) + smx[:, None, :]
    y_n2 = ln(y) * (1 + scy[:, None, :]) + smy[:, None, :]

    bq, bk, bv = jnp.split(params["b_qkv"][0], 3)
    q = x_n1 @ params["wq"] + bq
    k = y_n2 @ params["wk"] + bk
    v = y_n2 @ params["wv"] + bv
    q = q.reshape(B, Lx, num_head, dh).transpose(0, 2, 1, 3)
    k = k.reshape(B, Ly, num_head, dh).transpose(0, 2, 1, 3)
    v = v.reshape(B, Ly, num_head, dh).transpose(0, 2, 1, 3)
    s = jnp.einsum("bhqd,bhkd->bhqk", q, k) / math.sqrt(dh)
    p = jax.nn.softmax(s, axis=-1)
    o = jnp.einsum("bhqk,bhkd->bhqd", p, v).transpose(0, 2, 1, 3).reshape(B, Lx, Dx)
    o = o @ params["wo"] + params["bo"][0]

    x = x + gmx[:, None, :] * o

    x_n3 = ln(x) * (1 + sclx[:, None, :]) + smlx[:, None, :]
    h1 = x_n3 @ params["w1"] + params["b1"][0]
    g = 0.5 * h1 * (1.0 + jnp.tanh(0.7978845608028654 * (h1 + 0.044715 * h1 ** 3)))
    mlp = g @ params["w2"] + params["b2"][0]
    return x + glx[:, None, :] * mlp


# ----------------------------------------------------------------------------
def init_params(key, Dx, Dy, num_head, mlp_ratio=4.0):
    H = int(Dx * mlp_ratio)
    ks = jax.random.split(key, 16)
    n = lambda k, shape, s=0.02: (s * jax.random.normal(k, shape)).astype(jnp.float32)
    return {
        # adaLN linears (stored as (in, out) for row-vector matmul)
        "w_adaln_x": n(ks[0], (Dx, 6 * Dx)), "b_adaln_x": n(ks[1], (1, 6 * Dx)),
        "w_adaln_y": n(ks[2], (Dx, 6 * Dy)), "b_adaln_y": n(ks[3], (1, 6 * Dy)),
        # cross attention (separate projections since kdim != embed_dim)
        "wq": n(ks[4], (Dx, Dx)), "wk": n(ks[5], (Dy, Dx)), "wv": n(ks[6], (Dy, Dx)),
        "b_qkv": n(ks[7], (1, 3 * Dx)),
        "wo": n(ks[8], (Dx, Dx)), "bo": n(ks[9], (1, Dx)),
        # MLP
        "w1": n(ks[10], (Dx, H)), "b1": n(ks[11], (1, H)),
        "w2": n(ks[12], (H, Dx)), "b2": n(ks[13], (1, Dx)),
    }


if __name__ == "__main__":
    B, Lx, Ly = 2, 8, 8
    Dx, Dy = 32, 16
    num_head = 4

    key = jax.random.PRNGKey(0)
    kx, kc, ky, kp = jax.random.split(key, 4)
    x = jax.random.normal(kx, (B, Lx, Dx), dtype=jnp.float32)
    c = jax.random.normal(kc, (B, Dx), dtype=jnp.float32)
    y = jax.random.normal(ky, (B, Ly, Dy), dtype=jnp.float32)
    params = init_params(kp, Dx, Dy, num_head)
    prepped = prepare_params(params, num_head)

    out = cross_dit_block(x, c, y, prepped, num_head)
    out = jax.block_until_ready(out)

    ref = jax.block_until_ready(cross_dit_block_ref(x, c, y, params, num_head))
    if not np.allclose(np.asarray(out), np.asarray(ref), rtol=3e-2, atol=3e-2):
        raise AssertionError("Pallas kernel does not match JAX reference")

    print("KERNEL_OK")
</pallas_src>

<mosaic_0001>
module attributes {stable_mosaic.version = 11 : i64} {
  func.func @_cross_dit_kernel(%arg0: i32, %arg1: i32, %arg2: memref<1x8x32xf32, #tpu.memory_space<vmem>>, %arg3: memref<1x32x8xbf16, #tpu.memory_space<vmem>>, %arg4: memref<1x8x32xbf16, #tpu.memory_space<vmem>>, %arg5: memref<1x1x32xf32, #tpu.memory_space<vmem>>, %arg6: memref<1x1x32xf32, #tpu.memory_space<vmem>>, %arg7: memref<1x1x32xf32, #tpu.memory_space<vmem>>, %arg8: memref<1x1x32xf32, #tpu.memory_space<vmem>>, %arg9: memref<1x1x32xf32, #tpu.memory_space<vmem>>, %arg10: memref<1x1x32xf32, #tpu.memory_space<vmem>>, %arg11: memref<32x32xbf16, #tpu.memory_space<vmem>>, %arg12: memref<1x32xf32, #tpu.memory_space<vmem>>, %arg13: memref<32x32xbf16, #tpu.memory_space<vmem>>, %arg14: memref<1x32xf32, #tpu.memory_space<vmem>>, %arg15: memref<32x128xbf16, #tpu.memory_space<vmem>>, %arg16: memref<1x128xf32, #tpu.memory_space<vmem>>, %arg17: memref<128x32xbf16, #tpu.memory_space<vmem>>, %arg18: memref<1x32xf32, #tpu.memory_space<vmem>>, %arg19: memref<1x8x32xf32, #tpu.memory_space<vmem>>, %arg20: memref<8x32xbf16, #tpu.memory_space<vmem>>) attributes {dimension_semantics = [#tpu.dimension_semantics<parallel>, #tpu.dimension_semantics<parallel>], iteration_bounds = array<i64: 2, 1>, scalar_prefetch = 0 : i64, scratch_operands = 1 : i64, tpu.core_type = #tpu.core_type<tc>, window_params = [{transform_indices = @transform_0, window_bounds = array<i64: 1, 8, 32>}, {transform_indices = @transform_1, window_bounds = array<i64: 1, 32, 8>}, {transform_indices = @transform_2, window_bounds = array<i64: 1, 8, 32>}, {transform_indices = @transform_3, window_bounds = array<i64: 1, 1, 32>}, {transform_indices = @transform_4, window_bounds = array<i64: 1, 1, 32>}, {transform_indices = @transform_5, window_bounds = array<i64: 1, 1, 32>}, {transform_indices = @transform_6, window_bounds = array<i64: 1, 1, 32>}, {transform_indices = @transform_7, window_bounds = array<i64: 1, 1, 32>}, {transform_indices = @transform_8, window_bounds = array<i64: 1, 1, 32>}, {pipeline_mode = #tpu.pipeline_mode<synchronous>, transform_indices = @transform_9, window_bounds = array<i64: 32, 32>}, {pipeline_mode = #tpu.pipeline_mode<synchronous>, transform_indices = @transform_10, window_bounds = array<i64: 1, 32>}, {pipeline_mode = #tpu.pipeline_mode<synchronous>, transform_indices = @transform_11, window_bounds = array<i64: 32, 32>}, {pipeline_mode = #tpu.pipeline_mode<synchronous>, transform_indices = @transform_12, window_bounds = array<i64: 1, 32>}, {pipeline_mode = #tpu.pipeline_mode<synchronous>, transform_indices = @transform_13, window_bounds = array<i64: 32, 128>}, {pipeline_mode = #tpu.pipeline_mode<synchronous>, transform_indices = @transform_14, window_bounds = array<i64: 1, 128>}, {pipeline_mode = #tpu.pipeline_mode<synchronous>, transform_indices = @transform_15, window_bounds = array<i64: 128, 32>}, {pipeline_mode = #tpu.pipeline_mode<synchronous>, transform_indices = @transform_16, window_bounds = array<i64: 1, 32>}, {transform_indices = @transform_17, window_bounds = array<i64: 1, 8, 32>}]} {
    %c0 = arith.constant 0 : index
    %c0_0 = arith.constant 0 : index
    %c0_1 = arith.constant 0 : index
    %0 = vector.load %arg2[%c0, %c0_0, %c0_1] : memref<1x8x32xf32, #tpu.memory_space<vmem>>, vector<1x8x32xf32>
    %1 = vector.shape_cast %0 : vector<1x8x32xf32> to vector<8x32xf32>
    %c0_2 = arith.constant 0 : index
    %c0_3 = arith.constant 0 : index
    %c0_4 = arith.constant 0 : index
    %2 = vector.load %arg5[%c0_2, %c0_3, %c0_4] : memref<1x1x32xf32, #tpu.memory_space<vmem>>, vector<1x1x32xf32>
    %3 = vector.shape_cast %2 : vector<1x1x32xf32> to vector<1x32xf32>
    %c0_5 = arith.constant 0 : index
    %c0_6 = arith.constant 0 : index
    %c0_7 = arith.constant 0 : index
    %4 = vector.load %arg6[%c0_5, %c0_6, %c0_7] : memref<1x1x32xf32, #tpu.memory_space<vmem>>, vector<1x1x32xf32>
    %5 = vector.shape_cast %4 : vector<1x1x32xf32> to vector<1x32xf32>
    %c0_8 = arith.constant 0 : index
    %c0_9 = arith.constant 0 : index
    %c0_10 = arith.constant 0 : index
    %6 = vector.load %arg7[%c0_8, %c0_9, %c0_10] : memref<1x1x32xf32, #tpu.memory_space<vmem>>, vector<1x1x32xf32>
    %7 = vector.shape_cast %6 : vector<1x1x32xf32> to vector<1x32xf32>
    %c0_11 = arith.constant 0 : index
    %c0_12 = arith.constant 0 : index
    %c0_13 = arith.constant 0 : index
    %8 = vector.load %arg8[%c0_11, %c0_12, %c0_13] : memref<1x1x32xf32, #tpu.memory_space<vmem>>, vector<1x1x32xf32>
    %9 = vector.shape_cast %8 : vector<1x1x32xf32> to vector<1x32xf32>
    %c0_14 = arith.constant 0 : index
    %c0_15 = arith.constant 0 : index
    %c0_16 = arith.constant 0 : index
    %10 = vector.load %arg9[%c0_14, %c0_15, %c0_16] : memref<1x1x32xf32, #tpu.memory_space<vmem>>, vector<1x1x32xf32>
    %11 = vector.shape_cast %10 : vector<1x1x32xf32> to vector<1x32xf32>
    %c0_17 = arith.constant 0 : index
    %c0_18 = arith.constant 0 : index
    %c0_19 = arith.constant 0 : index
    %12 = vector.load %arg10[%c0_17, %c0_18, %c0_19] : memref<1x1x32xf32, #tpu.memory_space<vmem>>, vector<1x1x32xf32>
    %13 = vector.shape_cast %12 : vector<1x1x32xf32> to vector<1x32xf32>
    %cst = arith.constant dense<0.000000e+00> : vector<8xf32>
    %14 = vector.multi_reduction <add>, %1, %cst [1] : vector<8x32xf32> to vector<8xf32>
    %15 = vector.shape_cast %14 : vector<8xf32> to vector<8x1xf32>
    %cst_20 = arith.constant 3.200000e+01 : f32
    %16 = vector.broadcast %cst_20 : f32 to vector<8x1xf32>
    %17 = arith.divf %15, %16 : vector<8x1xf32>
    %18 = vector.broadcast %17 : vector<8x1xf32> to vector<8x32xf32>
    %19 = arith.subf %1, %18 : vector<8x32xf32>
    %20 = arith.mulf %19, %19 : vector<8x32xf32>
    %cst_21 = arith.constant dense<0.000000e+00> : vector<8xf32>
    %21 = vector.multi_reduction <add>, %20, %cst_21 [1] : vector<8x32xf32> to vector<8xf32>
    %22 = vector.shape_cast %21 : vector<8xf32> to vector<8x1xf32>
    %cst_22 = arith.constant 3.200000e+01 : f32
    %23 = vector.broadcast %cst_22 : f32 to vector<8x1xf32>
    %24 = arith.divf %22, %23 : vector<8x1xf32>
    %25 = vector.broadcast %17 : vector<8x1xf32> to vector<8x32xf32>
    %26 = arith.subf %1, %25 : vector<8x32xf32>
    %cst_23 = arith.constant 9.99999997E-7 : f32
    %27 = vector.broadcast %cst_23 : f32 to vector<8x1xf32>
    %28 = arith.addf %24, %27 : vector<8x1xf32>
    %29 = math.rsqrt %28 : vector<8x1xf32>
    %30 = vector.broadcast %29 : vector<8x1xf32> to vector<8x32xf32>
    %31 = arith.mulf %26, %30 : vector<8x32xf32>
    %cst_24 = arith.constant 1.000000e+00 : f32
    %32 = vector.broadcast %cst_24 : f32 to vector<1x32xf32>
    %33 = arith.addf %32, %5 : vector<1x32xf32>
    %34 = vector.broadcast %33 : vector<1x32xf32> to vector<8x32xf32>
    %35 = arith.mulf %31, %34 : vector<8x32xf32>
    %36 = vector.broadcast %3 : vector<1x32xf32> to vector<8x32xf32>
    %37 = arith.addf %35, %36 : vector<8x32xf32>
    %38 = arith.truncf %37 : vector<8x32xf32> to vector<8x32xbf16>
    %c0_25 = arith.constant 0 : index
    %c0_26 = arith.constant 0 : index
    %39 = vector.load %arg11[%c0_25, %c0_26] : memref<32x32xbf16, #tpu.memory_space<vmem>>, vector<32x32xbf16>
    %cst_27 = arith.constant dense<0.000000e+00> : vector<8x32xf32>
    %40 = tpu.matmul %38, %39, %cst_27 {dimension_numbers = #tpu.dot_dimension_numbers<[1], [0], [0], [1], [0, 0, 1, 1], [], []>} : vector<8x32xbf16>, vector<32x32xbf16>, vector<8x32xf32> -> vector<8x32xf32>
    %c0_28 = arith.constant 0 : index
    %c0_29 = arith.constant 0 : index
    %41 = vector.load %arg12[%c0_28, %c0_29] : memref<1x32xf32, #tpu.memory_space<vmem>>, vector<1x32xf32>
    %42 = vector.broadcast %41 : vector<1x32xf32> to vector<8x32xf32>
    %43 = arith.addf %40, %42 : vector<8x32xf32>
    %44 = arith.truncf %43 : vector<8x32xf32> to vector<8x32xbf16>
    %c0_30 = arith.constant 0 : index
    %c0_31 = arith.constant 0 : index
    %c0_32 = arith.constant 0 : index
    %45 = vector.load %arg3[%c0_30, %c0_31, %c0_32] : memref<1x32x8xbf16, #tpu.memory_space<vmem>>, vector<1x32x8xbf16>
    %46 = vector.shape_cast %45 : vector<1x32x8xbf16> to vector<32x8xbf16>
    %c0_33 = arith.constant 0 : index
    %c0_34 = arith.constant 0 : index
    %c0_35 = arith.constant 0 : index
    %47 = vector.load %arg4[%c0_33, %c0_34, %c0_35] : memref<1x8x32xbf16, #tpu.memory_space<vmem>>, vector<1x8x32xbf16>
    %48 = vector.shape_cast %47 : vector<1x8x32xbf16> to vector<8x32xbf16>
    %49 = vector.extract_strided_slice %44 {offsets = [0, 0], sizes = [8, 8], strides = [1, 1]} : vector<8x32xbf16> to vector<8x8xbf16>
    %50 = vector.extract_strided_slice %46 {offsets = [0, 0], sizes = [8, 8], strides = [1, 1]} : vector<32x8xbf16> to vector<8x8xbf16>
    %cst_36 = arith.constant dense<0.000000e+00> : vector<8x8xf32>
    %51 = tpu.matmul %49, %50, %cst_36 {dimension_numbers = #tpu.dot_dimension_numbers<[1], [0], [0], [1], [0, 0, 1, 1], [], []>} : vector<8x8xbf16>, vector<8x8xbf16>, vector<8x8xf32> -> vector<8x8xf32>
    %cst_37 = arith.constant dense<0xFF800000> : vector<8xf32>
    %52 = vector.multi_reduction <maximumf>, %51, %cst_37 [1] : vector<8x8xf32> to vector<8xf32>
    %53 = vector.shape_cast %52 : vector<8xf32> to vector<8x1xf32>
    %54 = vector.broadcast %53 : vector<8x1xf32> to vector<8x8xf32>
    %55 = arith.subf %51, %54 : vector<8x8xf32>
    %56 = math.exp %55 : vector<8x8xf32>
    %cst_38 = arith.constant dense<0.000000e+00> : vector<8xf32>
    %57 = vector.multi_reduction <add>, %56, %cst_38 [1] : vector<8x8xf32> to vector<8xf32>
    %58 = vector.shape_cast %57 : vector<8xf32> to vector<8x1xf32>
    %59 = tpu.reciprocal %58 {approx = true} : vector<8x1xf32> -> vector<8x1xf32>
    %60 = vector.broadcast %59 : vector<8x1xf32> to vector<8x8xf32>
    %61 = arith.mulf %56, %60 : vector<8x8xf32>
    %62 = arith.truncf %61 : vector<8x8xf32> to vector<8x8xbf16>
    %63 = vector.extract_strided_slice %48 {offsets = [0, 0], sizes = [8, 8], strides = [1, 1]} : vector<8x32xbf16> to vector<8x8xbf16>
    %cst_39 = arith.constant dense<0.000000e+00> : vector<8x8xf32>
    %64 = tpu.matmul %62, %63, %cst_39 {dimension_numbers = #tpu.dot_dimension_numbers<[1], [0], [0], [1], [0, 0, 1, 1], [], []>} : vector<8x8xbf16>, vector<8x8xbf16>, vector<8x8xf32> -> vector<8x8xf32>
    %65 = arith.truncf %64 : vector<8x8xf32> to vector<8x8xbf16>
    %c0_40 = arith.constant 0 : index
    %c0_41 = arith.constant 0 : index
    %66 = vector.load %arg20[%c0_40, %c0_41] : memref<8x32xbf16, #tpu.memory_space<vmem>>, vector<8x8xbf16>
    tpu.vector_store %arg20[%c0_40, %c0_41], %65 {strides = array<i32>} : memref<8x32xbf16, #tpu.memory_space<vmem>>, vector<8x8xbf16>,
    %67 = vector.extract_strided_slice %44 {offsets = [0, 8], sizes = [8, 8], strides = [1, 1]} : vector<8x32xbf16> to vector<8x8xbf16>
    %68 = vector.extract_strided_slice %46 {offsets = [8, 0], sizes = [8, 8], strides = [1, 1]} : vector<32x8xbf16> to vector<8x8xbf16>
    %cst_42 = arith.constant dense<0.000000e+00> : vector<8x8xf32>
    %69 = tpu.matmul %67, %68, %cst_42 {dimension_numbers = #tpu.dot_dimension_numbers<[1], [0], [0], [1], [0, 0, 1, 1], [], []>} : vector<8x8xbf16>, vector<8x8xbf16>, vector<8x8xf32> -> vector<8x8xf32>
    %cst_43 = arith.constant dense<0xFF800000> : vector<8xf32>
    %70 = vector.multi_reduction <maximumf>, %69, %cst_43 [1] : vector<8x8xf32> to vector<8xf32>
    %71 = vector.shape_cast %70 : vector<8xf32> to vector<8x1xf32>
    %72 = vector.broadcast %71 : vector<8x1xf32> to vector<8x8xf32>
    %73 = arith.subf %69, %72 : vector<8x8xf32>
    %74 = math.exp %73 : vector<8x8xf32>
    %cst_44 = arith.constant dense<0.000000e+00> : vector<8xf32>
    %75 = vector.multi_reduction <add>, %74, %cst_44 [1] : vector<8x8xf32> to vector<8xf32>
    %76 = vector.shape_cast %75 : vector<8xf32> to vector<8x1xf32>
    %77 = tpu.reciprocal %76 {approx = true} : vector<8x1xf32> -> vector<8x1xf32>
    %78 = vector.broadcast %77 : vector<8x1xf32> to vector<8x8xf32>
    %79 = arith.mulf %74, %78 : vector<8x8xf32>
    %80 = arith.truncf %79 : vector<8x8xf32> to vector<8x8xbf16>
    %81 = vector.extract_strided_slice %48 {offsets = [0, 8], sizes = [8, 8], strides = [1, 1]} : vector<8x32xbf16> to vector<8x8xbf16>
    %cst_45 = arith.constant dense<0.000000e+00> : vector<8x8xf32>
    %82 = tpu.matmul %80, %81, %cst_45 {dimension_numbers = #tpu.dot_dimension_numbers<[1], [0], [0], [1], [0, 0, 1, 1], [], []>} : vector<8x8xbf16>, vector<8x8xbf16>, vector<8x8xf32> -> vector<8x8xf32>
    %83 = arith.truncf %82 : vector<8x8xf32> to vector<8x8xbf16>
    %c0_46 = arith.constant 0 : index
    %c8 = arith.constant 8 : index
    %84 = vector.load %arg20[%c0_46, %c8] : memref<8x32xbf16, #tpu.memory_space<vmem>>, vector<8x8xbf16>
    tpu.vector_store %arg20[%c0_46, %c8], %83 {strides = array<i32>} : memref<8x32xbf16, #tpu.memory_space<vmem>>, vector<8x8xbf16>,
    %85 = vector.extract_strided_slice %44 {offsets = [0, 16], sizes = [8, 8], strides = [1, 1]} : vector<8x32xbf16> to vector<8x8xbf16>
    %86 = vector.extract_strided_slice %46 {offsets = [16, 0], sizes = [8, 8], strides = [1, 1]} : vector<32x8xbf16> to vector<8x8xbf16>
    %cst_47 = arith.constant dense<0.000000e+00> : vector<8x8xf32>
    %87 = tpu.matmul %85, %86, %cst_47 {dimension_numbers = #tpu.dot_dimension_numbers<[1], [0], [0], [1], [0, 0, 1, 1], [], []>} : vector<8x8xbf16>, vector<8x8xbf16>, vector<8x8xf32> -> vector<8x8xf32>
    %cst_48 = arith.constant dense<0xFF800000> : vector<8xf32>
    %88 = vector.multi_reduction <maximumf>, %87, %cst_48 [1] : vector<8x8xf32> to vector<8xf32>
    %89 = vector.shape_cast %88 : vector<8xf32> to vector<8x1xf32>
    %90 = vector.broadcast %89 : vector<8x1xf32> to vector<8x8xf32>
    %91 = arith.subf %87, %90 : vector<8x8xf32>
    %92 = math.exp %91 : vector<8x8xf32>
    %cst_49 = arith.constant dense<0.000000e+00> : vector<8xf32>
    %93 = vector.multi_reduction <add>, %92, %cst_49 [1] : vector<8x8xf32> to vector<8xf32>
    %94 = vector.shape_cast %93 : vector<8xf32> to vector<8x1xf32>
    %95 = tpu.reciprocal %94 {approx = true} : vector<8x1xf32> -> vector<8x1xf32>
    %96 = vector.broadcast %95 : vector<8x1xf32> to vector<8x8xf32>
    %97 = arith.mulf %92, %96 : vector<8x8xf32>
    %98 = arith.truncf %97 : vector<8x8xf32> to vector<8x8xbf16>
    %99 = vector.extract_strided_slice %48 {offsets = [0, 16], sizes = [8, 8], strides = [1, 1]} : vector<8x32xbf16> to vector<8x8xbf16>
    %cst_50 = arith.constant dense<0.000000e+00> : vector<8x8xf32>
    %100 = tpu.matmul %98, %99, %cst_50 {dimension_numbers = #tpu.dot_dimension_numbers<[1], [0], [0], [1], [0, 0, 1, 1], [], []>} : vector<8x8xbf16>, vector<8x8xbf16>, vector<8x8xf32> -> vector<8x8xf32>
    %101 = arith.truncf %100 : vector<8x8xf32> to vector<8x8xbf16>
    %c0_51 = arith.constant 0 : index
    %c16 = arith.constant 16 : index
    %102 = vector.load %arg20[%c0_51, %c16] : memref<8x32xbf16, #tpu.memory_space<vmem>>, vector<8x8xbf16>
    tpu.vector_store %arg20[%c0_51, %c16], %101 {strides = array<i32>} : memref<8x32xbf16, #tpu.memory_space<vmem>>, vector<8x8xbf16>,
    %103 = vector.extract_strided_slice %44 {offsets = [0, 24], sizes = [8, 8], strides = [1, 1]} : vector<8x32xbf16> to vector<8x8xbf16>
    %104 = vector.extract_strided_slice %46 {offsets = [24, 0], sizes = [8, 8], strides = [1, 1]} : vector<32x8xbf16> to vector<8x8xbf16>
    %cst_52 = arith.constant dense<0.000000e+00> : vector<8x8xf32>
    %105 = tpu.matmul %103, %104, %cst_52 {dimension_numbers = #tpu.dot_dimension_numbers<[1], [0], [0], [1], [0, 0, 1, 1], [], []>} : vector<8x8xbf16>, vector<8x8xbf16>, vector<8x8xf32> -> vector<8x8xf32>
    %cst_53 = arith.constant dense<0xFF800000> : vector<8xf32>
    %106 = vector.multi_reduction <maximumf>, %105, %cst_53 [1] : vector<8x8xf32> to vector<8xf32>
    %107 = vector.shape_cast %106 : vector<8xf32> to vector<8x1xf32>
    %108 = vector.broadcast %107 : vector<8x1xf32> to vector<8x8xf32>
    %109 = arith.subf %105, %108 : vector<8x8xf32>
    %110 = math.exp %109 : vector<8x8xf32>
    %cst_54 = arith.constant dense<0.000000e+00> : vector<8xf32>
    %111 = vector.multi_reduction <add>, %110, %cst_54 [1] : vector<8x8xf32> to vector<8xf32>
    %112 = vector.shape_cast %111 : vector<8xf32> to vector<8x1xf32>
    %113 = tpu.reciprocal %112 {approx = true} : vector<8x1xf32> -> vector<8x1xf32>
    %114 = vector.broadcast %113 : vector<8x1xf32> to vector<8x8xf32>
    %115 = arith.mulf %110, %114 : vector<8x8xf32>
    %116 = arith.truncf %115 : vector<8x8xf32> to vector<8x8xbf16>
    %117 = vector.extract_strided_slice %48 {offsets = [0, 24], sizes = [8, 8], strides = [1, 1]} : vector<8x32xbf16> to vector<8x8xbf16>
    %cst_55 = arith.constant dense<0.000000e+00> : vector<8x8xf32>
    %118 = tpu.matmul %116, %117, %cst_55 {dimension_numbers = #tpu.dot_dimension_numbers<[1], [0], [0], [1], [0, 0, 1, 1], [], []>} : vector<8x8xbf16>, vector<8x8xbf16>, vector<8x8xf32> -> vector<8x8xf32>
    %119 = arith.truncf %118 : vector<8x8xf32> to vector<8x8xbf16>
    %c0_56 = arith.constant 0 : index
    %c24 = arith.constant 24 : index
    %120 = vector.load %arg20[%c0_56, %c24] : memref<8x32xbf16, #tpu.memory_space<vmem>>, vector<8x8xbf16>
    tpu.vector_store %arg20[%c0_56, %c24], %119 {strides = array<i32>} : memref<8x32xbf16, #tpu.memory_space<vmem>>, vector<8x8xbf16>,
    %c0_57 = arith.constant 0 : index
    %c0_58 = arith.constant 0 : index
    %121 = vector.load %arg20[%c0_57, %c0_58] : memref<8x32xbf16, #tpu.memory_space<vmem>>, vector<8x32xbf16>
    %c0_59 = arith.constant 0 : index
    %c0_60 = arith.constant 0 : index
    %122 = vector.load %arg13[%c0_59, %c0_60] : memref<32x32xbf16, #tpu.memory_space<vmem>>, vector<32x32xbf16>
    %cst_61 = arith.constant dense<0.000000e+00> : vector<8x32xf32>
    %123 = tpu.matmul %121, %122, %cst_61 {dimension_numbers = #tpu.dot_dimension_numbers<[1], [0], [0], [1], [0, 0, 1, 1], [], []>} : vector<8x32xbf16>, vector<32x32xbf16>, vector<8x32xf32> -> vector<8x32xf32>
    %c0_62 = arith.constant 0 : index
    %c0_63 = arith.constant 0 : index
    %124 = vector.load %arg14[%c0_62, %c0_63] : memref<1x32xf32, #tpu.memory_space<vmem>>, vector<1x32xf32>
    %125 = vector.broadcast %124 : vector<1x32xf32> to vector<8x32xf32>
    %126 = arith.addf %123, %125 : vector<8x32xf32>
    %127 = vector.broadcast %7 : vector<1x32xf32> to vector<8x32xf32>
    %128 = arith.mulf %127, %126 : vector<8x32xf32>
    %129 = arith.addf %1, %128 : vector<8x32xf32>
    %cst_64 = arith.constant dense<0.000000e+00> : vector<8xf32>
    %130 = vector.multi_reduction <add>, %129, %cst_64 [1] : vector<8x32xf32> to vector<8xf32>
    %131 = vector.shape_cast %130 : vector<8xf32> to vector<8x1xf32>
    %cst_65 = arith.constant 3.200000e+01 : f32
    %132 = vector.broadcast %cst_65 : f32 to vector<8x1xf32>
    %133 = arith.divf %131, %132 : vector<8x1xf32>
    %134 = vector.broadcast %133 : vector<8x1xf32> to vector<8x32xf32>
    %135 = arith.subf %129, %134 : vector<8x32xf32>
    %136 = arith.mulf %135, %135 : vector<8x32xf32>
    %cst_66 = arith.constant dense<0.000000e+00> : vector<8xf32>
    %137 = vector.multi_reduction <add>, %136, %cst_66 [1] : vector<8x32xf32> to vector<8xf32>
    %138 = vector.shape_cast %137 : vector<8xf32> to vector<8x1xf32>
    %cst_67 = arith.constant 3.200000e+01 : f32
    %139 = vector.broadcast %cst_67 : f32 to vector<8x1xf32>
    %140 = arith.divf %138, %139 : vector<8x1xf32>
    %141 = vector.broadcast %133 : vector<8x1xf32> to vector<8x32xf32>
    %142 = arith.subf %129, %141 : vector<8x32xf32>
    %cst_68 = arith.constant 9.99999997E-7 : f32
    %143 = vector.broadcast %cst_68 : f32 to vector<8x1xf32>
    %144 = arith.addf %140, %143 : vector<8x1xf32>
    %145 = math.rsqrt %144 : vector<8x1xf32>
    %146 = vector.broadcast %145 : vector<8x1xf32> to vector<8x32xf32>
    %147 = arith.mulf %142, %146 : vector<8x32xf32>
    %cst_69 = arith.constant 1.000000e+00 : f32
    %148 = vector.broadcast %cst_69 : f32 to vector<1x32xf32>
    %149 = arith.addf %148, %11 : vector<1x32xf32>
    %150 = vector.broadcast %149 : vector<1x32xf32> to vector<8x32xf32>
    %151 = arith.mulf %147, %150 : vector<8x32xf32>
    %152 = vector.broadcast %9 : vector<1x32xf32> to vector<8x32xf32>
    %153 = arith.addf %151, %152 : vector<8x32xf32>
    %154 = arith.truncf %153 : vector<8x32xf32> to vector<8x32xbf16>
    %c0_70 = arith.constant 0 : index
    %c0_71 = arith.constant 0 : index
    %155 = vector.load %arg15[%c0_70, %c0_71] : memref<32x128xbf16, #tpu.memory_space<vmem>>, vector<32x128xbf16>
    %cst_72 = arith.constant dense<0.000000e+00> : vector<8x128xf32>
    %156 = tpu.matmul %154, %155, %cst_72 {dimension_numbers = #tpu.dot_dimension_numbers<[1], [0], [0], [1], [0, 0, 1, 1], [], []>} : vector<8x32xbf16>, vector<32x128xbf16>, vector<8x128xf32> -> vector<8x128xf32>
    %c0_73 = arith.constant 0 : index
    %c0_74 = arith.constant 0 : index
    %157 = vector.load %arg16[%c0_73, %c0_74] : memref<1x128xf32, #tpu.memory_space<vmem>>, vector<1x128xf32>
    %158 = vector.broadcast %157 : vector<1x128xf32> to vector<8x128xf32>
    %159 = arith.addf %156, %158 : vector<8x128xf32>
    %cst_75 = arith.constant 5.000000e-01 : f32
    %160 = vector.broadcast %cst_75 : f32 to vector<8x128xf32>
    %161 = arith.mulf %160, %159 : vector<8x128xf32>
    %cst_76 = arith.constant 4.471500e-02 : f32
    %162 = vector.broadcast %cst_76 : f32 to vector<8x128xf32>
    %163 = arith.mulf %162, %159 : vector<8x128xf32>
    %164 = arith.mulf %163, %159 : vector<8x128xf32>
    %165 = arith.mulf %164, %159 : vector<8x128xf32>
    %166 = arith.addf %159, %165 : vector<8x128xf32>
    %cst_77 = arith.constant 0.797884583 : f32
    %167 = vector.broadcast %cst_77 : f32 to vector<8x128xf32>
    %168 = arith.mulf %167, %166 : vector<8x128xf32>
    %169 = math.tanh %168 : vector<8x128xf32>
    %cst_78 = arith.constant 1.000000e+00 : f32
    %170 = vector.broadcast %cst_78 : f32 to vector<8x128xf32>
    %171 = arith.addf %170, %169 : vector<8x128xf32>
    %172 = arith.mulf %161, %171 : vector<8x128xf32>
    %173 = arith.truncf %172 : vector<8x128xf32> to vector<8x128xbf16>
    %c0_79 = arith.constant 0 : index
    %c0_80 = arith.constant 0 : index
    %174 = vector.load %arg17[%c0_79, %c0_80] : memref<128x32xbf16, #tpu.memory_space<vmem>>, vector<128x32xbf16>
    %cst_81 = arith.constant dense<0.000000e+00> : vector<8x32xf32>
    %175 = tpu.matmul %173, %174, %cst_81 {dimension_numbers = #tpu.dot_dimension_numbers<[1], [0], [0], [1], [0, 0, 1, 1], [], []>} : vector<8x128xbf16>, vector<128x32xbf16>, vector<8x32xf32> -> vector<8x32xf32>
    %c0_82 = arith.constant 0 : index
    %c0_83 = arith.constant 0 : index
    %176 = vector.load %arg18[%c0_82, %c0_83] : memref<1x32xf32, #tpu.memory_space<vmem>>, vector<1x32xf32>
    %177 = vector.broadcast %176 : vector<1x32xf32> to vector<8x32xf32>
    %178 = arith.addf %175, %177 : vector<8x32xf32>
    %179 = vector.broadcast %13 : vector<1x32xf32> to vector<8x32xf32>
    %180 = arith.mulf %179, %178 : vector<8x32xf32>
    %181 = arith.addf %129, %180 : vector<8x32xf32>
    %c0_84 = arith.constant 0 : index
    %c0_85 = arith.constant 0 : index
    %c0_86 = arith.constant 0 : index
    %182 = vector.load %arg19[%c0_84, %c0_85, %c0_86] : memref<1x8x32xf32, #tpu.memory_space<vmem>>, vector<1x8x32xf32>
    %183 = vector.shape_cast %182 : vector<1x8x32xf32> to vector<8x32xf32>
    %184 = vector.shape_cast %181 : vector<8x32xf32> to vector<1x8x32xf32>
    tpu.vector_store %arg19[%c0_84, %c0_85, %c0_86], %184 {strides = array<i32>} : memref<1x8x32xf32, #tpu.memory_space<vmem>>, vector<1x8x32xf32>,
    return
  }
  func.func @transform_0(%arg0: i32, %arg1: i32) -> (i32, i32, i32) {
    %c0_i32 = arith.constant 0 : i32
    %c0_i32_0 = arith.constant 0 : i32
    return %arg0, %arg1, %c0_i32 : i32, i32, i32
  }
  func.func @transform_1(%arg0: i32, %arg1: i32) -> (i32, i32, i32) {
    %c0_i32 = arith.constant 0 : i32
    %c0_i32_0 = arith.constant 0 : i32
    %c0_i32_1 = arith.constant 0 : i32
    return %arg0, %c0_i32, %c0_i32_0 : i32, i32, i32
  }
  func.func @transform_2(%arg0: i32, %arg1: i32) -> (i32, i32, i32) {
    %c0_i32 = arith.constant 0 : i32
    %c0_i32_0 = arith.constant 0 : i32
    %c0_i32_1 = arith.constant 0 : i32
    return %arg0, %c0_i32, %c0_i32_0 : i32, i32, i32
  }
  func.func @transform_3(%arg0: i32, %arg1: i32) -> (i32, i32, i32) {
    %c0_i32 = arith.constant 0 : i32
    %c0_i32_0 = arith.constant 0 : i32
    %c0_i32_1 = arith.constant 0 : i32
    return %arg0, %c0_i32, %c0_i32_0 : i32, i32, i32
  }
  func.func @transform_4(%arg0: i32, %arg1: i32) -> (i32, i32, i32) {
    %c0_i32 = arith.constant 0 : i32
    %c0_i32_0 = arith.constant 0 : i32
    %c0_i32_1 = arith.constant 0 : i32
    return %arg0, %c0_i32, %c0_i32_0 : i32, i32, i32
  }
  func.func @transform_5(%arg0: i32, %arg1: i32) -> (i32, i32, i32) {
    %c0_i32 = arith.constant 0 : i32
    %c0_i32_0 = arith.constant 0 : i32
    %c0_i32_1 = arith.constant 0 : i32
    return %arg0, %c0_i32, %c0_i32_0 : i32, i32, i32
  }
  func.func @transform_6(%arg0: i32, %arg1: i32) -> (i32, i32, i32) {
    %c0_i32 = arith.constant 0 : i32
    %c0_i32_0 = arith.constant 0 : i32
    %c0_i32_1 = arith.constant 0 : i32
    return %arg0, %c0_i32, %c0_i32_0 : i32, i32, i32
  }
  func.func @transform_7(%arg0: i32, %arg1: i32) -> (i32, i32, i32) {
    %c0_i32 = arith.constant 0 : i32
    %c0_i32_0 = arith.constant 0 : i32
    %c0_i32_1 = arith.constant 0 : i32
    return %arg0, %c0_i32, %c0_i32_0 : i32, i32, i32
  }
  func.func @transform_8(%arg0: i32, %arg1: i32) -> (i32, i32, i32) {
    %c0_i32 = arith.constant 0 : i32
    %c0_i32_0 = arith.constant 0 : i32
    %c0_i32_1 = arith.constant 0 : i32
    return %arg0, %c0_i32, %c0_i32_0 : i32, i32, i32
  }
  func.func @transform_9(%arg0: i32, %arg1: i32) -> (i32, i32) {
    %c0_i32 = arith.constant 0 : i32
    %c0_i32_0 = arith.constant 0 : i32
    %c0_i32_1 = arith.constant 0 : i32
    return %c0_i32, %c0_i32_0 : i32, i32
  }
  func.func @transform_10(%arg0: i32, %arg1: i32) -> (i32, i32) {
    %c0_i32 = arith.constant 0 : i32
    %c0_i32_0 = arith.constant 0 : i32
    %c0_i32_1 = arith.constant 0 : i32
    return %c0_i32, %c0_i32_0 : i32, i32
  }
  func.func @transform_11(%arg0: i32, %arg1: i32) -> (i32, i32) {
    %c0_i32 = arith.constant 0 : i32
    %c0_i32_0 = arith.constant 0 : i32
    %c0_i32_1 = arith.constant 0 : i32
    return %c0_i32, %c0_i32_0 : i32, i32
  }
  func.func @transform_12(%arg0: i32, %arg1: i32) -> (i32, i32) {
    %c0_i32 = arith.constant 0 : i32
    %c0_i32_0 = arith.constant 0 : i32
    %c0_i32_1 = arith.constant 0 : i32
    return %c0_i32, %c0_i32_0 : i32, i32
  }
  func.func @transform_13(%arg0: i32, %arg1: i32) -> (i32, i32) {
    %c0_i32 = arith.constant 0 : i32
    %c0_i32_0 = arith.constant 0 : i32
    %c0_i32_1 = arith.constant 0 : i32
    return %c0_i32, %c0_i32_0 : i32, i32
  }
  func.func @transform_14(%arg0: i32, %arg1: i32) -> (i32, i32) {
    %c0_i32 = arith.constant 0 : i32
    %c0_i32_0 = arith.constant 0 : i32
    %c0_i32_1 = arith.constant 0 : i32
    return %c0_i32, %c0_i32_0 : i32, i32
  }
  func.func @transform_15(%arg0: i32, %arg1: i32) -> (i32, i32) {
    %c0_i32 = arith.constant 0 : i32
    %c0_i32_0 = arith.constant 0 : i32
    %c0_i32_1 = arith.constant 0 : i32
    return %c0_i32, %c0_i32_0 : i32, i32
  }
  func.func @transform_16(%arg0: i32, %arg1: i32) -> (i32, i32) {
    %c0_i32 = arith.constant 0 : i32
    %c0_i32_0 = arith.constant 0 : i32
    %c0_i32_1 = arith.constant 0 : i32
    return %c0_i32, %c0_i32_0 : i32, i32
  }
  func.func @transform_17(%arg0: i32, %arg1: i32) -> (i32, i32, i32) {
    %c0_i32 = arith.constant 0 : i32
    %c0_i32_0 = arith.constant 0 : i32
    return %arg0, %arg1, %c0_i32 : i32, i32, i32
  }
}

module attributes {stable_mosaic.version = 11 : i64} {
  func.func @_cross_dit_kernel(%arg0: i32, %arg1: i32, %arg2: memref<1x8x32xf32, #tpu.memory_space<vmem>>, %arg3: memref<1x32x8xbf16, #tpu.memory_space<vmem>>, %arg4: memref<1x8x32xbf16, #tpu.memory_space<vmem>>, %arg5: memref<1x1x32xf32, #tpu.memory_space<vmem>>, %arg6: memref<1x1x32xf32, #tpu.memory_space<vmem>>, %arg7: memref<1x1x32xf32, #tpu.memory_space<vmem>>, %arg8: memref<1x1x32xf32, #tpu.memory_space<vmem>>, %arg9: memref<1x1x32xf32, #tpu.memory_space<vmem>>, %arg10: memref<1x1x32xf32, #tpu.memory_space<vmem>>, %arg11: memref<32x32xbf16, #tpu.memory_space<vmem>>, %arg12: memref<1x32xf32, #tpu.memory_space<vmem>>, %arg13: memref<32x32xbf16, #tpu.memory_space<vmem>>, %arg14: memref<1x32xf32, #tpu.memory_space<vmem>>, %arg15: memref<32x128xbf16, #tpu.memory_space<vmem>>, %arg16: memref<1x128xf32, #tpu.memory_space<vmem>>, %arg17: memref<128x32xbf16, #tpu.memory_space<vmem>>, %arg18: memref<1x32xf32, #tpu.memory_space<vmem>>, %arg19: memref<1x8x32xf32, #tpu.memory_space<vmem>>, %arg20: memref<8x32xbf16, #tpu.memory_space<vmem>>) attributes {dimension_semantics = [#tpu.dimension_semantics<parallel>, #tpu.dimension_semantics<parallel>], iteration_bounds = array<i64: 2, 1>, scalar_prefetch = 0 : i64, scratch_operands = 1 : i64, tpu.core_type = #tpu.core_type<tc>, window_params = [{transform_indices = @transform_0, window_bounds = array<i64: 1, 8, 32>}, {transform_indices = @transform_1, window_bounds = array<i64: 1, 32, 8>}, {transform_indices = @transform_2, window_bounds = array<i64: 1, 8, 32>}, {transform_indices = @transform_3, window_bounds = array<i64: 1, 1, 32>}, {transform_indices = @transform_4, window_bounds = array<i64: 1, 1, 32>}, {transform_indices = @transform_5, window_bounds = array<i64: 1, 1, 32>}, {transform_indices = @transform_6, window_bounds = array<i64: 1, 1, 32>}, {transform_indices = @transform_7, window_bounds = array<i64: 1, 1, 32>}, {transform_indices = @transform_8, window_bounds = array<i64: 1, 1, 32>}, {pipeline_mode = #tpu.pipeline_mode<synchronous>, transform_indices = @transform_9, window_bounds = array<i64: 32, 32>}, {pipeline_mode = #tpu.pipeline_mode<synchronous>, transform_indices = @transform_10, window_bounds = array<i64: 1, 32>}, {pipeline_mode = #tpu.pipeline_mode<synchronous>, transform_indices = @transform_11, window_bounds = array<i64: 32, 32>}, {pipeline_mode = #tpu.pipeline_mode<synchronous>, transform_indices = @transform_12, window_bounds = array<i64: 1, 32>}, {pipeline_mode = #tpu.pipeline_mode<synchronous>, transform_indices = @transform_13, window_bounds = array<i64: 32, 128>}, {pipeline_mode = #tpu.pipeline_mode<synchronous>, transform_indices = @transform_14, window_bounds = array<i64: 1, 128>}, {pipeline_mode = #tpu.pipeline_mode<synchronous>, transform_indices = @transform_15, window_bounds = array<i64: 128, 32>}, {pipeline_mode = #tpu.pipeline_mode<synchronous>, transform_indices = @transform_16, window_bounds = array<i64: 1, 32>}, {transform_indices = @transform_17, window_bounds = array<i64: 1, 8, 32>}]} {
    %c0 = arith.constant 0 : index
    %c0_0 = arith.constant 0 : index
    %c0_1 = arith.constant 0 : index
    %0 = vector.load %arg2[%c0, %c0_0, %c0_1] : memref<1x8x32xf32, #tpu.memory_space<vmem>>, vector<1x8x32xf32>
    %1 = vector.shape_cast %0 : vector<1x8x32xf32> to vector<8x32xf32>
    %c0_2 = arith.constant 0 : index
    %c0_3 = arith.constant 0 : index
    %c0_4 = arith.constant 0 : index
    %2 = vector.load %arg5[%c0_2, %c0_3, %c0_4] : memref<1x1x32xf32, #tpu.memory_space<vmem>>, vector<1x1x32xf32>
    %3 = vector.shape_cast %2 : vector<1x1x32xf32> to vector<1x32xf32>
    %c0_5 = arith.constant 0 : index
    %c0_6 = arith.constant 0 : index
    %c0_7 = arith.constant 0 : index
    %4 = vector.load %arg6[%c0_5, %c0_6, %c0_7] : memref<1x1x32xf32, #tpu.memory_space<vmem>>, vector<1x1x32xf32>
    %5 = vector.shape_cast %4 : vector<1x1x32xf32> to vector<1x32xf32>
    %c0_8 = arith.constant 0 : index
    %c0_9 = arith.constant 0 : index
    %c0_10 = arith.constant 0 : index
    %6 = vector.load %arg7[%c0_8, %c0_9, %c0_10] : memref<1x1x32xf32, #tpu.memory_space<vmem>>, vector<1x1x32xf32>
    %7 = vector.shape_cast %6 : vector<1x1x32xf32> to vector<1x32xf32>
    %c0_11 = arith.constant 0 : index
    %c0_12 = arith.constant 0 : index
    %c0_13 = arith.constant 0 : index
    %8 = vector.load %arg8[%c0_11, %c0_12, %c0_13] : memref<1x1x32xf32, #tpu.memory_space<vmem>>, vector<1x1x32xf32>
    %9 = vector.shape_cast %8 : vector<1x1x32xf32> to vector<1x32xf32>
    %c0_14 = arith.constant 0 : index
    %c0_15 = arith.constant 0 : index
    %c0_16 = arith.constant 0 : index
    %10 = vector.load %arg9[%c0_14, %c0_15, %c0_16] : memref<1x1x32xf32, #tpu.memory_space<vmem>>, vector<1x1x32xf32>
    %11 = vector.shape_cast %10 : vector<1x1x32xf32> to vector<1x32xf32>
    %c0_17 = arith.constant 0 : index
    %c0_18 = arith.constant 0 : index
    %c0_19 = arith.constant 0 : index
    %12 = vector.load %arg10[%c0_17, %c0_18, %c0_19] : memref<1x1x32xf32, #tpu.memory_space<vmem>>, vector<1x1x32xf32>
    %13 = vector.shape_cast %12 : vector<1x1x32xf32> to vector<1x32xf32>
    %cst = arith.constant dense<0.000000e+00> : vector<8xf32>
    %14 = vector.multi_reduction <add>, %1, %cst [1] : vector<8x32xf32> to vector<8xf32>
    %15 = vector.shape_cast %14 : vector<8xf32> to vector<8x1xf32>
    %cst_20 = arith.constant 3.200000e+01 : f32
    %16 = vector.broadcast %cst_20 : f32 to vector<8x1xf32>
    %17 = arith.divf %15, %16 : vector<8x1xf32>
    %18 = vector.broadcast %17 : vector<8x1xf32> to vector<8x32xf32>
    %19 = arith.subf %1, %18 : vector<8x32xf32>
    %20 = arith.mulf %19, %19 : vector<8x32xf32>
    %cst_21 = arith.constant dense<0.000000e+00> : vector<8xf32>
    %21 = vector.multi_reduction <add>, %20, %cst_21 [1] : vector<8x32xf32> to vector<8xf32>
    %22 = vector.shape_cast %21 : vector<8xf32> to vector<8x1xf32>
    %cst_22 = arith.constant 3.200000e+01 : f32
    %23 = vector.broadcast %cst_22 : f32 to vector<8x1xf32>
    %24 = arith.divf %22, %23 : vector<8x1xf32>
    %25 = vector.broadcast %17 : vector<8x1xf32> to vector<8x32xf32>
    %26 = arith.subf %1, %25 : vector<8x32xf32>
    %cst_23 = arith.constant 9.99999997E-7 : f32
    %27 = vector.broadcast %cst_23 : f32 to vector<8x1xf32>
    %28 = arith.addf %24, %27 : vector<8x1xf32>
    %29 = math.rsqrt %28 : vector<8x1xf32>
    %30 = vector.broadcast %29 : vector<8x1xf32> to vector<8x32xf32>
    %31 = arith.mulf %26, %30 : vector<8x32xf32>
    %cst_24 = arith.constant 1.000000e+00 : f32
    %32 = vector.broadcast %cst_24 : f32 to vector<1x32xf32>
    %33 = arith.addf %32, %5 : vector<1x32xf32>
    %34 = vector.broadcast %33 : vector<1x32xf32> to vector<8x32xf32>
    %35 = arith.mulf %31, %34 : vector<8x32xf32>
    %36 = vector.broadcast %3 : vector<1x32xf32> to vector<8x32xf32>
    %37 = arith.addf %35, %36 : vector<8x32xf32>
    %38 = arith.truncf %37 : vector<8x32xf32> to vector<8x32xbf16>
    %c0_25 = arith.constant 0 : index
    %c0_26 = arith.constant 0 : index
    %39 = vector.load %arg11[%c0_25, %c0_26] : memref<32x32xbf16, #tpu.memory_space<vmem>>, vector<32x32xbf16>
    %cst_27 = arith.constant dense<0.000000e+00> : vector<8x32xf32>
    %40 = tpu.matmul %38, %39, %cst_27 {dimension_numbers = #tpu.dot_dimension_numbers<[1], [0], [0], [1], [0, 0, 1, 1], [], []>} : vector<8x32xbf16>, vector<32x32xbf16>, vector<8x32xf32> -> vector<8x32xf32>
    %c0_28 = arith.constant 0 : index
    %c0_29 = arith.constant 0 : index
    %41 = vector.load %arg12[%c0_28, %c0_29] : memref<1x32xf32, #tpu.memory_space<vmem>>, vector<1x32xf32>
    %42 = vector.broadcast %41 : vector<1x32xf32> to vector<8x32xf32>
    %43 = arith.addf %40, %42 : vector<8x32xf32>
    %44 = arith.truncf %43 : vector<8x32xf32> to vector<8x32xbf16>
    %c0_30 = arith.constant 0 : index
    %c0_31 = arith.constant 0 : index
    %c0_32 = arith.constant 0 : index
    %45 = vector.load %arg3[%c0_30, %c0_31, %c0_32] : memref<1x32x8xbf16, #tpu.memory_space<vmem>>, vector<1x32x8xbf16>
    %46 = vector.shape_cast %45 : vector<1x32x8xbf16> to vector<32x8xbf16>
    %c0_33 = arith.constant 0 : index
    %c0_34 = arith.constant 0 : index
    %c0_35 = arith.constant 0 : index
    %47 = vector.load %arg4[%c0_33, %c0_34, %c0_35] : memref<1x8x32xbf16, #tpu.memory_space<vmem>>, vector<1x8x32xbf16>
    %48 = vector.shape_cast %47 : vector<1x8x32xbf16> to vector<8x32xbf16>
    %49 = vector.extract_strided_slice %44 {offsets = [0, 0], sizes = [8, 8], strides = [1, 1]} : vector<8x32xbf16> to vector<8x8xbf16>
    %50 = vector.extract_strided_slice %46 {offsets = [0, 0], sizes = [8, 8], strides = [1, 1]} : vector<32x8xbf16> to vector<8x8xbf16>
    %cst_36 = arith.constant dense<0.000000e+00> : vector<8x8xf32>
    %51 = tpu.matmul %49, %50, %cst_36 {dimension_numbers = #tpu.dot_dimension_numbers<[1], [0], [0], [1], [0, 0, 1, 1], [], []>} : vector<8x8xbf16>, vector<8x8xbf16>, vector<8x8xf32> -> vector<8x8xf32>
    %cst_37 = arith.constant dense<0xFF800000> : vector<8xf32>
    %52 = vector.multi_reduction <maximumf>, %51, %cst_37 [1] : vector<8x8xf32> to vector<8xf32>
    %53 = vector.shape_cast %52 : vector<8xf32> to vector<8x1xf32>
    %54 = vector.broadcast %53 : vector<8x1xf32> to vector<8x8xf32>
    %55 = arith.subf %51, %54 : vector<8x8xf32>
    %56 = math.exp %55 : vector<8x8xf32>
    %cst_38 = arith.constant dense<0.000000e+00> : vector<8xf32>
    %57 = vector.multi_reduction <add>, %56, %cst_38 [1] : vector<8x8xf32> to vector<8xf32>
    %58 = vector.shape_cast %57 : vector<8xf32> to vector<8x1xf32>
    %59 = tpu.reciprocal %58 {approx = true} : vector<8x1xf32> -> vector<8x1xf32>
    %60 = vector.broadcast %59 : vector<8x1xf32> to vector<8x8xf32>
    %61 = arith.mulf %56, %60 : vector<8x8xf32>
    %62 = arith.truncf %61 : vector<8x8xf32> to vector<8x8xbf16>
    %63 = vector.extract_strided_slice %48 {offsets = [0, 0], sizes = [8, 8], strides = [1, 1]} : vector<8x32xbf16> to vector<8x8xbf16>
    %cst_39 = arith.constant dense<0.000000e+00> : vector<8x8xf32>
    %64 = tpu.matmul %62, %63, %cst_39 {dimension_numbers = #tpu.dot_dimension_numbers<[1], [0], [0], [1], [0, 0, 1, 1], [], []>} : vector<8x8xbf16>, vector<8x8xbf16>, vector<8x8xf32> -> vector<8x8xf32>
    %65 = arith.truncf %64 : vector<8x8xf32> to vector<8x8xbf16>
    %c0_40 = arith.constant 0 : index
    %c0_41 = arith.constant 0 : index
    %66 = vector.load %arg20[%c0_40, %c0_41] : memref<8x32xbf16, #tpu.memory_space<vmem>>, vector<8x8xbf16>
    tpu.vector_store %arg20[%c0_40, %c0_41], %65 {strides = array<i32>} : memref<8x32xbf16, #tpu.memory_space<vmem>>, vector<8x8xbf16>,
    %67 = vector.extract_strided_slice %44 {offsets = [0, 8], sizes = [8, 8], strides = [1, 1]} : vector<8x32xbf16> to vector<8x8xbf16>
    %68 = vector.extract_strided_slice %46 {offsets = [8, 0], sizes = [8, 8], strides = [1, 1]} : vector<32x8xbf16> to vector<8x8xbf16>
    %cst_42 = arith.constant dense<0.000000e+00> : vector<8x8xf32>
    %69 = tpu.matmul %67, %68, %cst_42 {dimension_numbers = #tpu.dot_dimension_numbers<[1], [0], [0], [1], [0, 0, 1, 1], [], []>} : vector<8x8xbf16>, vector<8x8xbf16>, vector<8x8xf32> -> vector<8x8xf32>
    %cst_43 = arith.constant dense<0xFF800000> : vector<8xf32>
    %70 = vector.multi_reduction <maximumf>, %69, %cst_43 [1] : vector<8x8xf32> to vector<8xf32>
    %71 = vector.shape_cast %70 : vector<8xf32> to vector<8x1xf32>
    %72 = vector.broadcast %71 : vector<8x1xf32> to vector<8x8xf32>
    %73 = arith.subf %69, %72 : vector<8x8xf32>
    %74 = math.exp %73 : vector<8x8xf32>
    %cst_44 = arith.constant dense<0.000000e+00> : vector<8xf32>
    %75 = vector.multi_reduction <add>, %74, %cst_44 [1] : vector<8x8xf32> to vector<8xf32>
    %76 = vector.shape_cast %75 : vector<8xf32> to vector<8x1xf32>
    %77 = tpu.reciprocal %76 {approx = true} : vector<8x1xf32> -> vector<8x1xf32>
    %78 = vector.broadcast %77 : vector<8x1xf32> to vector<8x8xf32>
    %79 = arith.mulf %74, %78 : vector<8x8xf32>
    %80 = arith.truncf %79 : vector<8x8xf32> to vector<8x8xbf16>
    %81 = vector.extract_strided_slice %48 {offsets = [0, 8], sizes = [8, 8], strides = [1, 1]} : vector<8x32xbf16> to vector<8x8xbf16>
    %cst_45 = arith.constant dense<0.000000e+00> : vector<8x8xf32>
    %82 = tpu.matmul %80, %81, %cst_45 {dimension_numbers = #tpu.dot_dimension_numbers<[1], [0], [0], [1], [0, 0, 1, 1], [], []>} : vector<8x8xbf16>, vector<8x8xbf16>, vector<8x8xf32> -> vector<8x8xf32>
    %83 = arith.truncf %82 : vector<8x8xf32> to vector<8x8xbf16>
    %c0_46 = arith.constant 0 : index
    %c8 = arith.constant 8 : index
    %84 = vector.load %arg20[%c0_46, %c8] : memref<8x32xbf16, #tpu.memory_space<vmem>>, vector<8x8xbf16>
    tpu.vector_store %arg20[%c0_46, %c8], %83 {strides = array<i32>} : memref<8x32xbf16, #tpu.memory_space<vmem>>, vector<8x8xbf16>,
    %85 = vector.extract_strided_slice %44 {offsets = [0, 16], sizes = [8, 8], strides = [1, 1]} : vector<8x32xbf16> to vector<8x8xbf16>
    %86 = vector.extract_strided_slice %46 {offsets = [16, 0], sizes = [8, 8], strides = [1, 1]} : vector<32x8xbf16> to vector<8x8xbf16>
    %cst_47 = arith.constant dense<0.000000e+00> : vector<8x8xf32>
    %87 = tpu.matmul %85, %86, %cst_47 {dimension_numbers = #tpu.dot_dimension_numbers<[1], [0], [0], [1], [0, 0, 1, 1], [], []>} : vector<8x8xbf16>, vector<8x8xbf16>, vector<8x8xf32> -> vector<8x8xf32>
    %cst_48 = arith.constant dense<0xFF800000> : vector<8xf32>
    %88 = vector.multi_reduction <maximumf>, %87, %cst_48 [1] : vector<8x8xf32> to vector<8xf32>
    %89 = vector.shape_cast %88 : vector<8xf32> to vector<8x1xf32>
    %90 = vector.broadcast %89 : vector<8x1xf32> to vector<8x8xf32>
    %91 = arith.subf %87, %90 : vector<8x8xf32>
    %92 = math.exp %91 : vector<8x8xf32>
    %cst_49 = arith.constant dense<0.000000e+00> : vector<8xf32>
    %93 = vector.multi_reduction <add>, %92, %cst_49 [1] : vector<8x8xf32> to vector<8xf32>
    %94 = vector.shape_cast %93 : vector<8xf32> to vector<8x1xf32>
    %95 = tpu.reciprocal %94 {approx = true} : vector<8x1xf32> -> vector<8x1xf32>
    %96 = vector.broadcast %95 : vector<8x1xf32> to vector<8x8xf32>
    %97 = arith.mulf %92, %96 : vector<8x8xf32>
    %98 = arith.truncf %97 : vector<8x8xf32> to vector<8x8xbf16>
    %99 = vector.extract_strided_slice %48 {offsets = [0, 16], sizes = [8, 8], strides = [1, 1]} : vector<8x32xbf16> to vector<8x8xbf16>
    %cst_50 = arith.constant dense<0.000000e+00> : vector<8x8xf32>
    %100 = tpu.matmul %98, %99, %cst_50 {dimension_numbers = #tpu.dot_dimension_numbers<[1], [0], [0], [1], [0, 0, 1, 1], [], []>} : vector<8x8xbf16>, vector<8x8xbf16>, vector<8x8xf32> -> vector<8x8xf32>
    %101 = arith.truncf %100 : vector<8x8xf32> to vector<8x8xbf16>
    %c0_51 = arith.constant 0 : index
    %c16 = arith.constant 16 : index
    %102 = vector.load %arg20[%c0_51, %c16] : memref<8x32xbf16, #tpu.memory_space<vmem>>, vector<8x8xbf16>
    tpu.vector_store %arg20[%c0_51, %c16], %101 {strides = array<i32>} : memref<8x32xbf16, #tpu.memory_space<vmem>>, vector<8x8xbf16>,
    %103 = vector.extract_strided_slice %44 {offsets = [0, 24], sizes = [8, 8], strides = [1, 1]} : vector<8x32xbf16> to vector<8x8xbf16>
    %104 = vector.extract_strided_slice %46 {offsets = [24, 0], sizes = [8, 8], strides = [1, 1]} : vector<32x8xbf16> to vector<8x8xbf16>
    %cst_52 = arith.constant dense<0.000000e+00> : vector<8x8xf32>
    %105 = tpu.matmul %103, %104, %cst_52 {dimension_numbers = #tpu.dot_dimension_numbers<[1], [0], [0], [1], [0, 0, 1, 1], [], []>} : vector<8x8xbf16>, vector<8x8xbf16>, vector<8x8xf32> -> vector<8x8xf32>
    %cst_53 = arith.constant dense<0xFF800000> : vector<8xf32>
    %106 = vector.multi_reduction <maximumf>, %105, %cst_53 [1] : vector<8x8xf32> to vector<8xf32>
    %107 = vector.shape_cast %106 : vector<8xf32> to vector<8x1xf32>
    %108 = vector.broadcast %107 : vector<8x1xf32> to vector<8x8xf32>
    %109 = arith.subf %105, %108 : vector<8x8xf32>
    %110 = math.exp %109 : vector<8x8xf32>
    %cst_54 = arith.constant dense<0.000000e+00> : vector<8xf32>
    %111 = vector.multi_reduction <add>, %110, %cst_54 [1] : vector<8x8xf32> to vector<8xf32>
    %112 = vector.shape_cast %111 : vector<8xf32> to vector<8x1xf32>
    %113 = tpu.reciprocal %112 {approx = true} : vector<8x1xf32> -> vector<8x1xf32>
    %114 = vector.broadcast %113 : vector<8x1xf32> to vector<8x8xf32>
    %115 = arith.mulf %110, %114 : vector<8x8xf32>
    %116 = arith.truncf %115 : vector<8x8xf32> to vector<8x8xbf16>
    %117 = vector.extract_strided_slice %48 {offsets = [0, 24], sizes = [8, 8], strides = [1, 1]} : vector<8x32xbf16> to vector<8x8xbf16>
    %cst_55 = arith.constant dense<0.000000e+00> : vector<8x8xf32>
    %118 = tpu.matmul %116, %117, %cst_55 {dimension_numbers = #tpu.dot_dimension_numbers<[1], [0], [0], [1], [0, 0, 1, 1], [], []>} : vector<8x8xbf16>, vector<8x8xbf16>, vector<8x8xf32> -> vector<8x8xf32>
    %119 = arith.truncf %118 : vector<8x8xf32> to vector<8x8xbf16>
    %c0_56 = arith.constant 0 : index
    %c24 = arith.constant 24 : index
    %120 = vector.load %arg20[%c0_56, %c24] : memref<8x32xbf16, #tpu.memory_space<vmem>>, vector<8x8xbf16>
    tpu.vector_store %arg20[%c0_56, %c24], %119 {strides = array<i32>} : memref<8x32xbf16, #tpu.memory_space<vmem>>, vector<8x8xbf16>,
    %c0_57 = arith.constant 0 : index
    %c0_58 = arith.constant 0 : index
    %121 = vector.load %arg20[%c0_57, %c0_58] : memref<8x32xbf16, #tpu.memory_space<vmem>>, vector<8x32xbf16>
    %c0_59 = arith.constant 0 : index
    %c0_60 = arith.constant 0 : index
    %122 = vector.load %arg13[%c0_59, %c0_60] : memref<32x32xbf16, #tpu.memory_space<vmem>>, vector<32x32xbf16>
    %cst_61 = arith.constant dense<0.000000e+00> : vector<8x32xf32>
    %123 = tpu.matmul %121, %122, %cst_61 {dimension_numbers = #tpu.dot_dimension_numbers<[1], [0], [0], [1], [0, 0, 1, 1], [], []>} : vector<8x32xbf16>, vector<32x32xbf16>, vector<8x32xf32> -> vector<8x32xf32>
    %c0_62 = arith.constant 0 : index
    %c0_63 = arith.constant 0 : index
    %124 = vector.load %arg14[%c0_62, %c0_63] : memref<1x32xf32, #tpu.memory_space<vmem>>, vector<1x32xf32>
    %125 = vector.broadcast %124 : vector<1x32xf32> to vector<8x32xf32>
    %126 = arith.addf %123, %125 : vector<8x32xf32>
    %127 = vector.broadcast %7 : vector<1x32xf32> to vector<8x32xf32>
    %128 = arith.mulf %127, %126 : vector<8x32xf32>
    %129 = arith.addf %1, %128 : vector<8x32xf32>
    %cst_64 = arith.constant dense<0.000000e+00> : vector<8xf32>
    %130 = vector.multi_reduction <add>, %129, %cst_64 [1] : vector<8x32xf32> to vector<8xf32>
    %131 = vector.shape_cast %130 : vector<8xf32> to vector<8x1xf32>
    %cst_65 = arith.constant 3.200000e+01 : f32
    %132 = vector.broadcast %cst_65 : f32 to vector<8x1xf32>
    %133 = arith.divf %131, %132 : vector<8x1xf32>
    %134 = vector.broadcast %133 : vector<8x1xf32> to vector<8x32xf32>
    %135 = arith.subf %129, %134 : vector<8x32xf32>
    %136 = arith.mulf %135, %135 : vector<8x32xf32>
    %cst_66 = arith.constant dense<0.000000e+00> : vector<8xf32>
    %137 = vector.multi_reduction <add>, %136, %cst_66 [1] : vector<8x32xf32> to vector<8xf32>
    %138 = vector.shape_cast %137 : vector<8xf32> to vector<8x1xf32>
    %cst_67 = arith.constant 3.200000e+01 : f32
    %139 = vector.broadcast %cst_67 : f32 to vector<8x1xf32>
    %140 = arith.divf %138, %139 : vector<8x1xf32>
    %141 = vector.broadcast %133 : vector<8x1xf32> to vector<8x32xf32>
    %142 = arith.subf %129, %141 : vector<8x32xf32>
    %cst_68 = arith.constant 9.99999997E-7 : f32
    %143 = vector.broadcast %cst_68 : f32 to vector<8x1xf32>
    %144 = arith.addf %140, %143 : vector<8x1xf32>
    %145 = math.rsqrt %144 : vector<8x1xf32>
    %146 = vector.broadcast %145 : vector<8x1xf32> to vector<8x32xf32>
    %147 = arith.mulf %142, %146 : vector<8x32xf32>
    %cst_69 = arith.constant 1.000000e+00 : f32
    %148 = vector.broadcast %cst_69 : f32 to vector<1x32xf32>
    %149 = arith.addf %148, %11 : vector<1x32xf32>
    %150 = vector.broadcast %149 : vector<1x32xf32> to vector<8x32xf32>
    %151 = arith.mulf %147, %150 : vector<8x32xf32>
    %152 = vector.broadcast %9 : vector<1x32xf32> to vector<8x32xf32>
    %153 = arith.addf %151, %152 : vector<8x32xf32>
    %154 = arith.truncf %153 : vector<8x32xf32> to vector<8x32xbf16>
    %c0_70 = arith.constant 0 : index
    %c0_71 = arith.constant 0 : index
    %155 = vector.load %arg15[%c0_70, %c0_71] : memref<32x128xbf16, #tpu.memory_space<vmem>>, vector<32x128xbf16>
    %cst_72 = arith.constant dense<0.000000e+00> : vector<8x128xf32>
    %156 = tpu.matmul %154, %155, %cst_72 {dimension_numbers = #tpu.dot_dimension_numbers<[1], [0], [0], [1], [0, 0, 1, 1], [], []>} : vector<8x32xbf16>, vector<32x128xbf16>, vector<8x128xf32> -> vector<8x128xf32>
    %c0_73 = arith.constant 0 : index
    %c0_74 = arith.constant 0 : index
    %157 = vector.load %arg16[%c0_73, %c0_74] : memref<1x128xf32, #tpu.memory_space<vmem>>, vector<1x128xf32>
    %158 = vector.broadcast %157 : vector<1x128xf32> to vector<8x128xf32>
    %159 = arith.addf %156, %158 : vector<8x128xf32>
    %cst_75 = arith.constant 5.000000e-01 : f32
    %160 = vector.broadcast %cst_75 : f32 to vector<8x128xf32>
    %161 = arith.mulf %160, %159 : vector<8x128xf32>
    %cst_76 = arith.constant 4.471500e-02 : f32
    %162 = vector.broadcast %cst_76 : f32 to vector<8x128xf32>
    %163 = arith.mulf %162, %159 : vector<8x128xf32>
    %164 = arith.mulf %163, %159 : vector<8x128xf32>
    %165 = arith.mulf %164, %159 : vector<8x128xf32>
    %166 = arith.addf %159, %165 : vector<8x128xf32>
    %cst_77 = arith.constant 0.797884583 : f32
    %167 = vector.broadcast %cst_77 : f32 to vector<8x128xf32>
    %168 = arith.mulf %167, %166 : vector<8x128xf32>
    %169 = math.tanh %168 : vector<8x128xf32>
    %cst_78 = arith.constant 1.000000e+00 : f32
    %170 = vector.broadcast %cst_78 : f32 to vector<8x128xf32>
    %171 = arith.addf %170, %169 : vector<8x128xf32>
    %172 = arith.mulf %161, %171 : vector<8x128xf32>
    %173 = arith.truncf %172 : vector<8x128xf32> to vector<8x128xbf16>
    %c0_79 = arith.constant 0 : index
    %c0_80 = arith.constant 0 : index
    %174 = vector.load %arg17[%c0_79, %c0_80] : memref<128x32xbf16, #tpu.memory_space<vmem>>, vector<128x32xbf16>
    %cst_81 = arith.constant dense<0.000000e+00> : vector<8x32xf32>
    %175 = tpu.matmul %173, %174, %cst_81 {dimension_numbers = #tpu.dot_dimension_numbers<[1], [0], [0], [1], [0, 0, 1, 1], [], []>} : vector<8x128xbf16>, vector<128x32xbf16>, vector<8x32xf32> -> vector<8x32xf32>
    %c0_82 = arith.constant 0 : index
    %c0_83 = arith.constant 0 : index
    %176 = vector.load %arg18[%c0_82, %c0_83] : memref<1x32xf32, #tpu.memory_space<vmem>>, vector<1x32xf32>
    %177 = vector.broadcast %176 : vector<1x32xf32> to vector<8x32xf32>
    %178 = arith.addf %175, %177 : vector<8x32xf32>
    %179 = vector.broadcast %13 : vector<1x32xf32> to vector<8x32xf32>
    %180 = arith.mulf %179, %178 : vector<8x32xf32>
    %181 = arith.addf %129, %180 : vector<8x32xf32>
    %c0_84 = arith.constant 0 : index
    %c0_85 = arith.constant 0 : index
    %c0_86 = arith.constant 0 : index
    %182 = vector.load %arg19[%c0_84, %c0_85, %c0_86] : memref<1x8x32xf32, #tpu.memory_space<vmem>>, vector<1x8x32xf32>
    %183 = vector.shape_cast %182 : vector<1x8x32xf32> to vector<8x32xf32>
    %184 = vector.shape_cast %181 : vector<8x32xf32> to vector<1x8x32xf32>
    tpu.vector_store %arg19[%c0_84, %c0_85, %c0_86], %184 {strides = array<i32>} : memref<1x8x32xf32, #tpu.memory_space<vmem>>, vector<1x8x32xf32>,
    return
  }
  func.func @transform_0(%arg0: i32, %arg1: i32) -> (i32, i32, i32) {
    %c0_i32 = arith.constant 0 : i32
    %c0_i32_0 = arith.constant 0 : i32
    return %arg0, %arg1, %c0_i32 : i32, i32, i32
  }
  func.func @transform_1(%arg0: i32, %arg1: i32) -> (i32, i32, i32) {
    %c0_i32 = arith.constant 0 : i32
    %c0_i32_0 = arith.constant 0 : i32
    %c0_i32_1 = arith.constant 0 : i32
    return %arg0, %c0_i32, %c0_i32_0 : i32, i32, i32
  }
  func.func @transform_2(%arg0: i32, %arg1: i32) -> (i32, i32, i32) {
    %c0_i32 = arith.constant 0 : i32
    %c0_i32_0 = arith.constant 0 : i32
    %c0_i32_1 = arith.constant 0 : i32
    return %arg0, %c0_i32, %c0_i32_0 : i32, i32, i32
  }
  func.func @transform_3(%arg0: i32, %arg1: i32) -> (i32, i32, i32) {
    %c0_i32 = arith.constant 0 : i32
    %c0_i32_0 = arith.constant 0 : i32
    %c0_i32_1 = arith.constant 0 : i32
    return %arg0, %c0_i32, %c0_i32_0 : i32, i32, i32
  }
  func.func @transform_4(%arg0: i32, %arg1: i32) -> (i32, i32, i32) {
    %c0_i32 = arith.constant 0 : i32
    %c0_i32_0 = arith.constant 0 : i32
    %c0_i32_1 = arith.constant 0 : i32
    return %arg0, %c0_i32, %c0_i32_0 : i32, i32, i32
  }
  func.func @transform_5(%arg0: i32, %arg1: i32) -> (i32, i32, i32) {
    %c0_i32 = arith.constant 0 : i32
    %c0_i32_0 = arith.constant 0 : i32
    %c0_i32_1 = arith.constant 0 : i32
    return %arg0, %c0_i32, %c0_i32_0 : i32, i32, i32
  }
  func.func @transform_6(%arg0: i32, %arg1: i32) -> (i32, i32, i32) {
    %c0_i32 = arith.constant 0 : i32
    %c0_i32_0 = arith.constant 0 : i32
    %c0_i32_1 = arith.constant 0 : i32
    return %arg0, %c0_i32, %c0_i32_0 : i32, i32, i32
  }
  func.func @transform_7(%arg0: i32, %arg1: i32) -> (i32, i32, i32) {
    %c0_i32 = arith.constant 0 : i32
    %c0_i32_0 = arith.constant 0 : i32
    %c0_i32_1 = arith.constant 0 : i32
    return %arg0, %c0_i32, %c0_i32_0 : i32, i32, i32
  }
  func.func @transform_8(%arg0: i32, %arg1: i32) -> (i32, i32, i32) {
    %c0_i32 = arith.constant 0 : i32
    %c0_i32_0 = arith.constant 0 : i32
    %c0_i32_1 = arith.constant 0 : i32
    return %arg0, %c0_i32, %c0_i32_0 : i32, i32, i32
  }
  func.func @transform_9(%arg0: i32, %arg1: i32) -> (i32, i32) {
    %c0_i32 = arith.constant 0 : i32
    %c0_i32_0 = arith.constant 0 : i32
    %c0_i32_1 = arith.constant 0 : i32
    return %c0_i32, %c0_i32_0 : i32, i32
  }
  func.func @transform_10(%arg0: i32, %arg1: i32) -> (i32, i32) {
    %c0_i32 = arith.constant 0 : i32
    %c0_i32_0 = arith.constant 0 : i32
    %c0_i32_1 = arith.constant 0 : i32
    return %c0_i32, %c0_i32_0 : i32, i32
  }
  func.func @transform_11(%arg0: i32, %arg1: i32) -> (i32, i32) {
    %c0_i32 = arith.constant 0 : i32
    %c0_i32_0 = arith.constant 0 : i32
    %c0_i32_1 = arith.constant 0 : i32
    return %c0_i32, %c0_i32_0 : i32, i32
  }
  func.func @transform_12(%arg0: i32, %arg1: i32) -> (i32, i32) {
    %c0_i32 = arith.constant 0 : i32
    %c0_i32_0 = arith.constant 0 : i32
    %c0_i32_1 = arith.constant 0 : i32
    return %c0_i32, %c0_i32_0 : i32, i32
  }
  func.func @transform_13(%arg0: i32, %arg1: i32) -> (i32, i32) {
    %c0_i32 = arith.constant 0 : i32
    %c0_i32_0 = arith.constant 0 : i32
    %c0_i32_1 = arith.constant 0 : i32
    return %c0_i32, %c0_i32_0 : i32, i32
  }
  func.func @transform_14(%arg0: i32, %arg1: i32) -> (i32, i32) {
    %c0_i32 = arith.constant 0 : i32
    %c0_i32_0 = arith.constant 0 : i32
    %c0_i32_1 = arith.constant 0 : i32
    return %c0_i32, %c0_i32_0 : i32, i32
  }
  func.func @transform_15(%arg0: i32, %arg1: i32) -> (i32, i32) {
    %c0_i32 = arith.constant 0 : i32
    %c0_i32_0 = arith.constant 0 : i32
    %c0_i32_1 = arith.constant 0 : i32
    return %c0_i32, %c0_i32_0 : i32, i32
  }
  func.func @transform_16(%arg0: i32, %arg1: i32) -> (i32, i32) {
    %c0_i32 = arith.constant 0 : i32
    %c0_i32_0 = arith.constant 0 : i32
    %c0_i32_1 = arith.constant 0 : i32
    return %c0_i32, %c0_i32_0 : i32, i32
  }
  func.func @transform_17(%arg0: i32, %arg1: i32) -> (i32, i32, i32) {
    %c0_i32 = arith.constant 0 : i32
    %c0_i32_0 = arith.constant 0 : i32
    return %arg0, %arg1, %c0_i32 : i32, i32, i32
  }
}

</mosaic_0001>

<bundles_post_ra>
// kernel: tpu_custom_call.1
= control target key start
LH: loop header
LB: loop body
LE: loop exit
PB: predicated region body
PF: predicated region fallthrough
CT: control target
= control target key end

     0   :  { %s2488_s0 = inlined_call_operand.vmem [shape: f32[2,8,32], index: 0, kind: input, shape index: {}]   ;;  %s2489_s1 = inlined_call_operand.vmem [shape: bf16[2,32,8], index: 1, kind: input, shape index: {}]   ;;  %s2490_s2 = inlined_call_operand.vmem [shape: bf16[2,8,32], index: 2, kind: input, shape index: {}]   ;;  %s2491_s3 = inlined_call_operand.vmem [shape: f32[2,1,32], index: 3, kind: input, shape index: {}]   ;;  %s2492_s4 = inlined_call_operand.vmem [shape: f32[2,1,32], index: 4, kind: input, shape index: {}]   ;;  %s2493_s5 = inlined_call_operand.vmem [shape: f32[2,1,32], index: 5, kind: input, shape index: {}]   ;;  %s2494_s6 = inlined_call_operand.vmem [shape: f32[2,1,32], index: 6, kind: input, shape index: {}]   ;;  %s2495_s7 = inlined_call_operand.vmem [shape: f32[2,1,32], index: 7, kind: input, shape index: {}]   ;;  %s2496_s8 = inlined_call_operand.vmem [shape: f32[2,1,32], index: 8, kind: input, shape index: {}]   ;;  %s2497_s9 = inlined_call_operand.vmem [shape: bf16[32,32], index: 9, kind: input, shape index: {}]   ;;  %s2498_s10 = inlined_call_operand.vmem [shape: f32[1,32], index: 10, kind: input, shape index: {}]   ;;  %s2499_s11 = inlined_call_operand.vmem [shape: bf16[32,32], index: 11, kind: input, shape index: {}]   ;;  %s2500_s12 = inlined_call_operand.vmem [shape: f32[1,32], index: 12, kind: input, shape index: {}]   ;;  %s2501_s13 = inlined_call_operand.vmem [shape: bf16[32,128], index: 13, kind: input, shape index: {}]   ;;  %s2502_s14 = inlined_call_operand.vmem [shape: f32[1,128], index: 14, kind: input, shape index: {}]   ;;  %s2503_s15 = inlined_call_operand.vmem [shape: bf16[128,32], index: 15, kind: input, shape index: {}]   ;;  %s2504_s16 = inlined_call_operand.vmem [shape: f32[1,32], index: 16, kind: input, shape index: {}]   ;;  %s2505_s17 = inlined_call_operand.hbm [shape: f32[2,8,32], index: 17, kind: output, shape index: {}]  }
   0x1   :  { %2508 = sst [smem:[#allocation9_spill]] %s2488_s0 }
   0x2   :  { %2509 = sst [smem:[#allocation10_spill]] %s2489_s1 }
   0x3   :  { %2510 = sst [smem:[#allocation11_spill]] %s2490_s2 }
   0x4   :  { %2511 = sst [smem:[#allocation12_spill]] %s2491_s3 }
   0x5   :  { %2512 = sst [smem:[#allocation13_spill]] %s2492_s4 }
   0x6   :  { %2513 = sst [smem:[#allocation14_spill]] %s2493_s5 }
   0x7   :  { %2514 = sst [smem:[#allocation15_spill]] %s2494_s6 }
   0x8   :  { %22 = vsyncpa [#allocation4], 0 }
   0x9   :  { %24 = vsyncpa [#allocation4 + $0x1], 0  ;;  %s2187_s24 = smov 0   ;;  %s2189_s25 = smov 0  }
   0xa   :  { %s2191_s26 = smov 0   ;;  %s2193_s27 = smov 0  }
   0xb   :  { %s2195_s28 = smov 0   ;;  %s2197_s29 = smov 0  }
   0xc LB: > { %2515 = sst [smem:[#allocation6_spill]] %s2082_s28  ;;  %s1729_s0 = sadd.s32 4294967295, %s2086_s29   ;;  %s2086_s29 = sphi %s2197_s29, %s30_s29   ;;  %s2082_s28 = sphi %s2195_s28, %s2529_s28   ;;  %s2078_s27 = sphi %s2193_s27, %s2528_s27   ;;  %s2074_s26 = sphi %s2191_s26, %s2532_s26   ;;  %s2070_s25 = sphi %s2189_s25, %s2531_s25   ;;  %s2066_s24 = sphi %s2187_s24, %s2530_s24  }
   0xd   : > { %s1730_s30 = sadd.s32 4294967294, %s2086_s29   ;;  %s42_s18 = sadd.s32 1, %s2082_s28 }
   0xe   : > { %s455_s19 = sadd.s32 1, %s2074_s26  ;;  %p44_p0 = scmp.ge.s32.totalorder %s42_s18, 2 }
   0xf   : > { %p465_p1 = scmp.ne.s32.totalorder %s2074_s26, %s2070_s25  ;;  %p466_p2 = scmp.eq.s32.totalorder %s1729_s0, 1 }
  0x10   : > { %p471_p3 = scmp.ne.s32.totalorder %s2070_s25, %s2066_s24  ;;  %s2534_s18 = smov (%p44_p0, %s42_s18), 0 }
  0x11   : > { %2516 = sst [smem:[#allocation7_spill]] %s2534_s18  ;;  %p2227_p4 = por %p466_p2, %p465_p1 }
  0x12   : > { %p472_p5 = scmp.eq.s32.totalorder %s1730_s30, 1  ;;  %s450_s20 = ssub.s32 %s2082_s28, %s2534_s18 }
  0x13   : > { %p1733_p6 = scmp.ge.s32.totalorder %s2086_s29, 1  ;;  %p453_p7 = scmp.eq.s32.totalorder %s450_s20, 0 }
  0x14   : > { %p2234_p8 = por %p472_p5, %p471_p3  ;;  %p575_p9 = scmp.lt.s32.totalorder %s2086_s29, 3 }
  0x15   : > { %s2240_s22 = scalar_select %p453_p7, %s2074_s26, %s455_s19  }
  0x16   : > { %p576_p10 = pnand %p1733_p6, %p575_p9 }
  0x17   : > { %2519 = sst [smem:[#allocation8_spill]] %s2240_s22  ;;  %p656_p11 = scmp.lt.s32.totalorder (!%p576_p10), %s2078_s27, 1 }
  0x18   : > { %579 = sbr.rel (%p576_p10) target bundleno = 2488 (0x9b8), region = 88  ;;  %s2520_s20 = sld [smem:[#allocation9_spill]] (!%p576_p10) }
  0x19   : > { %s2521_s4 = sld [smem:[#allocation13_spill]] (!%p576_p10)  ;;  %s2091_s22 = smov (!%p576_p10), 120  }
  0x1a   : > { %s2522_s3 = sld [smem:[#allocation12_spill]] (!%p576_p10)  ;;  %s2094_s19 = smov (!%p576_p10), 16  }
  0x1b   : > { %s2524_s2 = sld [smem:[#allocation11_spill]] (!%p576_p10) }
  0x1c   : > { %s2525_s5 = sld [smem:[#allocation14_spill]] (!%p576_p10) }
  0x1d   : > { %s2244_s23 = scalar_select %p656_p11, %s2078_s27, 1  ;;  %vm698_vm0 = vcmask 261120   ;;  %v1973_v7 = vld [vmem:[%s2497_s9 + $0x8] sm:$0xff]   ;;  %v2088_v8 = vmov 0.0   ;;  %vm2089_vm1 = vmmov 0   ;;  %v1974_v9 = vld [vmem:[%s2497_s9] sm:$0xff]   ;;  %v715_v13 = vlaneseq }
  0x1e   : > { %1818 = vmatprep.subr.bf16.mxu1 %v2088_v8  ;;  %1822 = vmatprep.mubr.msk.bf16.mxu1 %vm2089_vm1, %v2088_v8  ;;  %vm805_vm2 = vcmask 1043456   ;;  %v1740_v29 = vld [vmem:[%s2498_s10] ss:$0 sm:$0xff]  ;;  %vm801_vm3 = vcmask 64512   ;;  %vm908_vm4 = vcmask 60416   ;;  %vm1029_vm5 = vcmask 126016  }
  0x1f   : > { %s1735_s0 = sshll.u32 %s2244_s23, 3  ;;  %1819 = vmatpush3.bf16.msra.mxu1 %v1973_v7  ;;  %1838 = vmatprep.subr.bf16.mxu0 %v2088_v8  ;;  %s677_s30 = scalar_lea.vmem %s2521_s4, %s2244_s23  ;;  %v2274_v14 = vshrl.u32 %v715_v13, 7  ;;  %vm1146_vm6 = vcmask 191616   ;;  %vm1263_vm7 = vcmask 257216  }
  0x20   : > { %s662_s28 = scalar_lea.vmem %s2520_s20, %s1735_s0  ;;  %1820 = vmatprep.subr.bf16.mxu1 %v2088_v8  ;;  %1840 = vmatprep.mubr.msk.bf16.mxu0 %vm2089_vm1, %v2088_v8  ;;  %v693_v15 = vld [vmem:[%s677_s30] sm:$0x1]  ;;  %s1780_s18 = sshll.u32 %s2244_s23, 4 }
  0x21   : > { %v2250_v0 = vld [vmem:[%s662_s28] sm:$0xff]  ;;  %v713_v16 = vadd.f32 1.0, %v693_v15  ;;  %v717_v17 = vsub.s32 0, %v2274_v14  ;;  %s674_s28 = scalar_lea.vmem %s2522_s3, %s2244_s23  ;;  %s2523_s30 = sld [smem:[#allocation10_spill]]  ;;  %v1981_v14 = vld [vmem:[%s2503_s15 + $0x30] sm:$0xff]  }
  0x22   : > { %v699_v1 = vsel %vm698_vm0, %v2250_v0, 0.0  ;;  %v1739_v21 = vld [vmem:[%s674_s28] ss:$0 sm:$0xff]  ;;  %s2092_s0 = smov 112   ;;  %s2526_s6 = sld [smem:[#allocation15_spill]] }
  0x23   : > { %700 = vadd.xlane.f32.xlu0 %v699_v1  ;;  %1821 = vmatpush3.bf16.msra.mxu1 %v1974_v9  ;;  %v718_v18 = vrot.slane %v713_v16, %v717_v17 }
  0x24   : > { %1826 = vmatprep.subr.bf16.mxu1 %v2088_v8 }
  0x27   : > { %s2290_s20 = scalar_lea.vmem %s2523_s30, %s1780_s18  ;;  %s2090_s18 = smov 104  }
  0x28   : > { %v796_v25 = vld [vmem:[%s2290_s20] sm:$0xf]  ;;  %v797_v27 = vld [vmem:[%s2290_s20 + $0x4] sm:$0xf]  ;;  %v798_v36 = vld [vmem:[%s2290_s20 + $0x8] sm:$0xf] }
  0x29   : > { %v807_v26 = vsel %vm805_vm2, %v796_v25, 0  ;;  %v917_v28 = vsel %vm805_vm2, %v797_v27, 0  ;;  %v1037_v37 = vsel %vm805_vm2, %v798_v36, 0  ;;  %v799_v39 = vld [vmem:[%s2290_s20 + $0xc] sm:$0xf]  ;;  %s1738_s30 = sshll.u32 %s2244_s23, 2  ;;  %s686_s20 = scalar_lea.vmem %s2495_s7, %s2244_s23 }
  0x2a   : > { %1839 = vmatpush3.bf16.msra.mxu0 %v917_v28  ;;  %v1154_v40 = vsel %vm805_vm2, %v799_v39, 0  ;;  %s671_s28 = scalar_lea.vmem %s2524_s2, %s1738_s30  ;;  %s653_s30 = sand.u32 1, %s2070_s25  }
  0x2b   : > { %1850 = vmatprep.subr.bf16.mxu0 %v2088_v8 }
  0xac   : > { %v701_v2 = vpop.xlane.xlu0 %700 }
  0xad   : > { %v703_v3 = vmul.f32 0.03125, %v701_v2 }
  0xaf   : > { %v704_v4 = vsub.f32 %v2250_v0, %v703_v3 }
  0xb1   : > { %v705_v5 = vmul.f32 %v704_v4, %v704_v4 }
  0xb3   : > { %v706_v6 = vsel %vm698_vm0, %v705_v5, 0.0  ;;  %v800_v5 = vld [vmem:[%s671_s28] sm:$0xf]  ;;  %s2095_s28 = smov 24  }
  0xb4   : > { %707 = vadd.xlane.f32.xlu0 %v706_v6  ;;  %v865_v6 = vsel %vm805_vm2, %v800_v5, 0 }
 0x13d   : > { %v708_v10 = vpop.xlane.xlu0 %707 }
 0x13e   : > { %v709_v11 = vmul.f32 0.03125, %v708_v10 }
 0x140   : > { %v710_v12 = vadd.f32 1e-06, %v709_v11 }
 0x142   : > { %1988 = vrsqrt.f32 %v710_v12 }
 0x14f   : > { %v1989_v19 = vpop.eup %1988 }
 0x150   : > { %v712_v20 = vmul.f32 %v1989_v19, %v704_v4  ;;  %v1747_v19 = vcombine.low %v800_v5, %v800_v5 }
 0x152   : > { %v720_v22 = vmul.f32 %v718_v18, %v712_v20 }
 0x154   : > { %v727_v23 = vadd.f32 %v1739_v21, %v720_v22 }
 0x156   : > { %v728_v24 = vpack.c.bf16 %v727_v23, %v727_v23 }
 0x158   : > { %1823 = vmatmul.mubr.msk.bf16.vlgmr.msra.gmra.mxu1 %vm698_vm0, %v728_v24 }
 0x159   : > { %1828 = vmatprep.mubr.msk.bf16.mxu1 %vm2089_vm1, %v2088_v8  ;;  %1827 = vmatpush3.bf16.msra.mxu1 %v807_v26 }
 0x15a   : > { %1832 = vmatprep.subr.bf16.mxu1 %v2088_v8 }
 0x218   : > { %v789_v30 = vpop.f32.mrf.mxu1 }
 0x219   : > { %v790_v31 = vadd.f32 %v1740_v29, %v789_v30 }
 0x21a   : > { %v1824_v32 = vpop.f32.mrf.mxu1 }
 0x21b   : > { %v795_v33 = vpack.c.bf16 %v790_v31, %v790_v31 }
 0x21c   : > { %v792_v34 = vpop.f32.mrf.mxu1 }
 0x21d   : > { %1148 = vrot.lane.b32.xlu0 %v795_v33, %s2090_s18  ;;  %911 = vrot.lane.b32.xlu1 %v795_v33, %s2091_s22 }
 0x21e   : > { %1829 = vmatmul.mubr.msk.bf16.vlgmr.msra.gmra.mxu1 %vm801_vm3, %v795_v33  ;;  %v1825_v35 = vpop.f32.mrf.mxu1 }
 0x21f   : > { %1834 = vmatprep.mubr.msk.bf16.mxu1 %vm2089_vm1, %v2088_v8  ;;  %1833 = vmatpush3.bf16.msra.mxu1 %v865_v6 }
 0x220   : > { %1844 = vmatprep.subr.bf16.mxu1 %v2088_v8 }
 0x221   : > { %1031 = vrot.lane.b32.xlu1 %v795_v33, %s2092_s0 }
 0x28f   : > { %v912_v38 = vpop.permute.xlu1 %911  ;;  %v1149_v42 = vpop.permute.xlu0 %1148 }
 0x290   : > { %1841 = vmatmul.mubr.msk.bf16.vlgmr.msra.gmra.mxu0 %vm801_vm3, %v912_v38 }
 0x291   : > { %1851 = vmatpush3.bf16.msra.mxu0 %v1037_v37  ;;  %1852 = vmatprep.mubr.msk.bf16.mxu0 %vm2089_vm1, %v2088_v8 }
 0x292   : > { %1862 = vmatprep.subr.bf16.mxu0 %v2088_v8 }
 0x293   : > { %v1032_v41 = vpop.permute.xlu1 %1031 }
 0x298   : > { %1853 = vmatmul.mubr.msk.bf16.vlgmr.msra.gmra.mxu0 %vm801_vm3, %v1032_v41 }
 0x299   : > { %1863 = vmatpush3.bf16.msra.mxu0 %v1154_v40  ;;  %1864 = vmatprep.mubr.msk.bf16.mxu0 %vm2089_vm1, %v2088_v8 }
 0x29a   : > { %1874 = vmatprep.subr.bf16.mxu0 %v2088_v8 }
 0x2a0   : > { %1865 = vmatmul.mubr.msk.bf16.vlgmr.msra.gmra.mxu0 %vm801_vm3, %v1149_v42 }
 0x2a1   : > { %1878 = vmatprep.mubr.msk.bf16.mxu0 %vm2089_vm1, %v2088_v8 }
 0x2de   : > { %v843_v43 = vpop.f32.mrf.mxu1 }
 0x2df   : > { %v849_v44 = vsel %vm801_vm3, %v843_v43, -inf }
 0x2e0   : > { %850 = vmax.xlane.f32.xlu1 %v849_v44  ;;  %v1830_v45 = vpop.f32.mrf.mxu1 }
 0x2e2   : > { %v846_v46 = vpop.f32.mrf.mxu1 }
 0x2e4   : > { %v1831_v47 = vpop.f32.mrf.mxu1 }
 0x350   : > { %v953_v48 = vpop.f32.mrf.mxu0 }
 0x351   : > { %v959_v49 = vsel %vm801_vm3, %v953_v48, -inf }
 0x352   : > { %960 = vmax.xlane.f32.xlu0 %v959_v49  ;;  %v1842_v50 = vpop.f32.mrf.mxu0 }
 0x354   : > { %v956_v51 = vpop.f32.mrf.mxu0 }
 0x356   : > { %v1843_v52 = vpop.f32.mrf.mxu0 }
 0x358   : > { %v1073_v53 = vpop.f32.mrf.mxu0 }
 0x359   : > { %v1079_v54 = vsel %vm801_vm3, %v1073_v53, -inf }
 0x35a   : > { %v1854_v55 = vpop.f32.mrf.mxu0  ;;  %1080 = vmax.xlane.f32.xlu1 %v1079_v54 }
 0x35c   : > { %v1076_v56 = vpop.f32.mrf.mxu0 }
 0x35e   : > { %v1855_v57 = vpop.f32.mrf.mxu0 }
 0x360   : > { %v1190_v58 = vpop.f32.mrf.mxu0 }
 0x361   : > { %v1196_v59 = vsel %vm801_vm3, %v1190_v58, -inf }
 0x362   : > { %v1866_v60 = vpop.f32.mrf.mxu0  ;;  %1197 = vmax.xlane.f32.xlu1 %v1196_v59 }
 0x363   : > { %v1977_v60 = vld [vmem:[%s2499_s11] sm:$0xff]  }
 0x364   : > { %v1193_v61 = vpop.f32.mrf.mxu0 }
 0x366   : > { %v1867_v62 = vpop.f32.mrf.mxu0 }
 0x369   : > { %v851_v63 = vpop.xlane.xlu1 %850 }
 0x36a   : > { %v852_v1 = vsub.f32 %v843_v43, %v851_v63 }
 0x36c   : > { %v853_v2 = vmul.f32 1.442695, %v852_v1 }
 0x36e   : > { %1990 = vpow2.f32 %v853_v2 }
 0x37b   : > { %v1991_v3 = vpop.eup %1990 }
 0x37c   : > { %v855_v4 = vsel %vm801_vm3, %v1991_v3, 0.0 }
 0x37d   : > { %856 = vadd.xlane.f32.xlu1 %v855_v4 }
 0x3db   : > { %v961_v7 = vpop.xlane.xlu0 %960 }
 0x3dc   : > { %v962_v9 = vsub.f32 %v953_v48, %v961_v7 }
 0x3de   : > { %v963_v10 = vmul.f32 1.442695, %v962_v9 }
 0x3e0   : > { %1992 = vpow2.f32 %v963_v10 }
 0x3e3   : > { %v1081_v11 = vpop.xlane.xlu1 %1080 }
 0x3e4   : > { %v1082_v23 = vsub.f32 %v1073_v53, %v1081_v11 }
 0x3e6   : > { %v1083_v24 = vmul.f32 1.442695, %v1082_v23 }
 0x3eb   : > { %v1198_v12 = vpop.xlane.xlu1 %1197 }
 0x3ec   : > { %v1199_v13 = vsub.f32 %v1190_v58, %v1198_v12  ;;  %v1976_v58 = vld [vmem:[%s2499_s11 + $0x8] sm:$0xff]   ;;  %v1756_v12 = vld [vmem:[%s2500_s12] ss:$0 sm:$0xff] }
 0x3ed   : > { %v1993_v15 = vpop.eup %1992  ;;  %1875 = vmatpush3.bf16.msra.mxu0 %v1976_v58 }
 0x3ee   : > { %v1200_v16 = vmul.f32 1.442695, %v1199_v13  ;;  %v965_v18 = vsel %vm801_vm3, %v1993_v15, 0.0  ;;  %1876 = vmatprep.subr.bf16.mxu0 %v2088_v8 }
 0x3ef   : > { %966 = vadd.xlane.f32.xlu1 %v965_v18 }
 0x3f0   : > { %1994 = vpow2.f32 %v1200_v16 }
 0x3f1   : > { %1877 = vmatpush3.bf16.msra.mxu0 %v1977_v60 }
 0x3f2   : > { %1890 = vmatprep.subr.bf16.mxu0 %v2088_v8 }
 0x3fd   : > { %v1995_v20 = vpop.eup %1994 }
 0x3fe   : > { %v1202_v21 = vsel %vm801_vm3, %v1995_v20, 0.0 }
 0x3ff   : > { %1203 = vadd.xlane.f32.xlu0 %v1202_v21 }
 0x400   : > { %974 = vrot.lane.b32.xlu1 %v1747_v19, %s2091_s22 }
 0x406   : > { %v857_v22 = vpop.xlane.xlu1 %856 }
 0x407   : > { %1996 = vrcp.f32 %v857_v22 }
 0x408   : > { %1998 = vpow2.f32 %v1083_v24 }
 0x414   : > { %v1997_v25 = vpop.eup %1996 }
 0x415   : > { %v859_v26 = vmul.f32 %v1997_v25, %v1991_v3  ;;  %1091 = vrot.lane.b32.xlu0 %v1747_v19, %s2092_s0  ;;  %v1999_v28 = vpop.eup %1998  ;;  %s680_s0 = scalar_lea.vmem %s2525_s5, %s2244_s23 }
 0x416   : > { %v1085_v29 = vsel %vm801_vm3, %v1999_v28, 0.0  ;;  %v1760_v13 = vld [vmem:[%s680_s0] ss:$0 sm:$0xff]  ;;  %s1777_s0 = sshll.u32 %s2078_s27, 7  ;;  %s2096_s27 = smov [#allocation3]  }
 0x417   : > { %v860_v27 = vpack.c.bf16 %v859_v26, %v859_v26 }
 0x419   : > { %1835 = vmatmul.mubr.msk.bf16.vlgmr.msra.gmra.mxu1 %vm801_vm3, %v860_v27 }
 0x41a   : > { %1846 = vmatprep.mubr.msk.bf16.mxu1 %vm2089_vm1, %v2088_v8 }
 0x424   : > { %1086 = vadd.xlane.f32.xlu1 %v1085_v29  ;;  %v1979_v29 = vld [vmem:[%s2501_s13] sm:$0xff]  }
 0x435   : > { %1208 = vrot.lane.b32.xlu1 %v1747_v19, %s2090_s18  ;;  %s2093_s18 = smov 8  }
 0x478   : > { %v967_v30 = vpop.xlane.xlu1 %966 }
 0x479   : > { %2000 = vrcp.f32 %v967_v30 }
 0x47c   : > { %v975_v31 = vpop.permute.xlu1 %974 }
 0x47d   : > { %v980_v32 = vsel %vm805_vm2, %v975_v31, 0 }
 0x47e   : > { %1845 = vmatpush3.bf16.msra.mxu1 %v980_v32 }
 0x47f   : > { %1856 = vmatprep.subr.bf16.mxu1 %v2088_v8 }
 0x486   : > { %v2001_v33 = vpop.eup %2000 }
 0x487   : > { %v969_v34 = vmul.f32 %v2001_v33, %v1993_v15  ;;  %v696_v33 = vld [vmem:[%s686_s20] sm:$0x1]  ;;  %s1734_s20 = sshll.u32 %s653_s30, 3 }
 0x488   : > { %v1204_v35 = vpop.xlane.xlu0 %1203  ;;  %s655_s3 = scalar_lea.vmem [#allocation3], %s1734_s20  ;;  %s2014_s20 = sshll.u32 %s2096_s27, 4  ;;  %s2015_s20 = int_to_ptr.vmem [resolvable:$false] %s2014_s20 }
 0x489   : > { %v970_v36 = vpack.c.bf16 %v969_v34, %v969_v34  ;;  %v1353_v34 = vadd.f32 1.0, %v696_v33  ;;  %s1580_s4 = sshll.u32 %s655_s3, 4  ;;  %s1581_s4 = int_to_ptr.vmem [resolvable:$true] %s1580_s4 }
 0x48a   : > { %s2010_s2 = scalar_lea.vmem %s1581_s4, 128  ;;  %p2017_p1 = scmp.lt.s32.totalorder %s1581_s4, %s2015_s20 }
 0x48b   : > { %1847 = vmatmul.mubr.msk.bf16.vlgmr.msra.gmra.mxu1 %vm801_vm3, %v970_v36  ;;  %p2011_p12 = scmp.ne.s32.totalorder %s1581_s4, %s2010_s2 }
 0x48c   : > { %v1092_v37 = vpop.permute.xlu0 %1091  ;;  %1858 = vmatprep.mubr.msk.bf16.mxu1 %vm2089_vm1, %v2088_v8 }
 0x48d   : > { %v1097_v38 = vsel %vm805_vm2, %v1092_v37, 0  ;;  %p2012_p13 = pnand %p2011_p12, %p2227_p4 }
 0x48e   : > { %1857 = vmatpush3.bf16.msra.mxu1 %v1097_v38 }
 0x48f   : > { %1868 = vmatprep.subr.bf16.mxu1 %v2088_v8  ;;  %p2013_p0 = pneg %p2012_p13 }
 0x4ad   : > { %v1087_v39 = vpop.xlane.xlu1 %1086 }
 0x4ae   : > { %2002 = vrcp.f32 %v1087_v39 }
 0x4af   : > { %2004 = vrcp.f32 %v1204_v35  ;;  %v1358_v35 = vrot.slane %v1353_v34, %v717_v17  ;;  %v1982_v17 = vld [vmem:[%s2503_s15 + $0x28] sm:$0xff]  }
 0x4b1   : > { %v1209_v41 = vpop.permute.xlu1 %1208 }
 0x4b2   : > { %v1214_v43 = vsel %vm805_vm2, %v1209_v41, 0 }
 0x4bb   : > { %v2003_v40 = vpop.eup %2002 }
 0x4bc   : > { %v1089_v42 = vmul.f32 %v2003_v40, %v1999_v28  ;;  %v2005_v45 = vpop.eup %2004 }
 0x4bd   : > { %v1206_v46 = vmul.f32 %v2005_v45, %v1995_v20  ;;  %v1985_v45 = vld [vmem:[%s2503_s15 + $0x10] sm:$0xff]  }
 0x4be   : > { %v1090_v44 = vpack.c.bf16 %v1089_v42, %v1089_v42  ;;  %v1980_v42 = vld [vmem:[%s2503_s15 + $0x38] sm:$0xff]  }
 0x4bf   : > { %v1207_v47 = vpack.c.bf16 %v1206_v46, %v1206_v46  ;;  %v1986_v46 = vld [vmem:[%s2503_s15 + $0x8] sm:$0xff]  }
 0x4c0   : > { %1859 = vmatmul.mubr.msk.bf16.vlgmr.msra.gmra.mxu1 %vm801_vm3, %v1090_v44  ;;  %v1984_v44 = vld [vmem:[%s2503_s15 + $0x18] sm:$0xff]  }
 0x4c1   : > { %1869 = vmatpush3.bf16.msra.mxu1 %v1214_v43  ;;  %1870 = vmatprep.mubr.msk.bf16.mxu1 %vm2089_vm1, %v2088_v8  ;;  %v1983_v43 = vld [vmem:[%s2503_s15 + $0x20] sm:$0xff]  }
 0x4c2   : > { %1882 = vmatprep.subr.bf16.mxu1 %v2088_v8 }
 0x4c8   : > { %1871 = vmatmul.mubr.msk.bf16.vlgmr.msra.gmra.mxu1 %vm801_vm3, %v1207_v47  ;;  %v1987_v47 = vld [vmem:[%s2503_s15] sm:$0xff]  }
 0x4c9   : > { %1886 = vmatprep.mubr.msk.bf16.mxu1 %vm2089_vm1, %v2088_v8 }
 0x4d9   : > { %v901_v48 = vpop.f32.mrf.mxu1 }
 0x4da   : > { %v907_v49 = vpack.c.bf16 %v901_v48, %v901_v48  ;;  %v1762_v48 = vld [vmem:[%s2502_s14] ss:$0 sm:$0xff] }
 0x4db   : > { %v1836_v50 = vpop.f32.mrf.mxu1 }
 0x4dc   : > { %909 = vst.msk [vmem:[#allocation2] sm:$0xf] %vm908_vm4, %v907_v49 }
 0x4dd   : > { %v904_v51 = vpop.f32.mrf.mxu1 }
 0x4df   : > { %v1837_v52 = vpop.f32.mrf.mxu1 }
 0x54b   : > { %v1016_v53 = vpop.f32.mrf.mxu1 }
 0x54c   : > { %v1781_v54 = vpack.c.bf16 %v1016_v53, %v1016_v53 }
 0x54d   : > { %v1848_v55 = vpop.f32.mrf.mxu1 }
 0x54e   : > { %1026 = vrot.lane.b32.xlu1 %v1781_v54, %s2093_s18  ;;  %s683_s18 = scalar_lea.vmem %s2526_s6, %s2244_s23 }
 0x54f   : > { %v1019_v56 = vpop.f32.mrf.mxu1  ;;  %v1761_v38 = vld [vmem:[%s683_s18] ss:$0 sm:$0xff] }
 0x551   : > { %v1849_v57 = vpop.f32.mrf.mxu1 }
 0x580   : > { %v1133_v59 = vpop.f32.mrf.mxu1 }
 0x581   : > { %v1782_v61 = vpack.c.bf16 %v1133_v59, %v1133_v59 }
 0x582   : > { %v1860_v62 = vpop.f32.mrf.mxu1 }
 0x583   : > { %1143 = vrot.lane.b32.xlu0 %v1782_v61, %s2094_s19  ;;  %s1566_s19 = scalar_lea.sflag [#allocation4], %s653_s30 }
 0x584   : > { %v1136_v63 = vpop.f32.mrf.mxu1 }
 0x585   : > { %v1766_v63 = vld [vmem:[%s2504_s16] ss:$0 sm:$0xff] }
 0x586   : > { %v1861_v1 = vpop.f32.mrf.mxu1 }
 0x588   : > { %v1250_v2 = vpop.f32.mrf.mxu1 }
 0x589   : > { %v1783_v3 = vpack.c.bf16 %v1250_v2, %v1250_v2 }
 0x58a   : > { %v1872_v4 = vpop.f32.mrf.mxu1 }
 0x58b   : > { %1260 = vrot.lane.b32.xlu1 %v1783_v3, %s2095_s28  ;;  %s689_s28 = scalar_lea.vmem %s2496_s8, %s2244_s23  ;;  %s2447_s23 = scalar_lea.hbm %s2505_s17, %s1777_s0 }
 0x58c   : > { %v1253_v5 = vpop.f32.mrf.mxu1  ;;  %v1775_v1 = vld [vmem:[%s689_s28] ss:$0 sm:$0xff]  ;;  %s2016_s28 = scalar_lea.vmem %s2015_s20, 256 }
 0x58d   : > { %p2018_p2 = scmp.lt.s32.totalorder %s2016_s28, %s2010_s2 }
 0x58e   : > { %v1873_v6 = vpop.f32.mrf.mxu1 }
 0x58f   : > { %p2019_p3 = por %p2018_p2, %p2017_p1 }
 0x591   : > { %p2020_p5 = pnand %p2019_p3, %p2013_p0 }
 0x5c0   : > { %v1027_v7 = vpop.permute.xlu1 %1026 }
 0x5c1   : > { %1030 = vst.msk [vmem:[#allocation2] sm:$0xf] %vm1029_vm5, %v1027_v7 }
 0x5f5   : > { %v1144_v9 = vpop.permute.xlu0 %1143 }
 0x5f6   : > { %1147 = vst.msk [vmem:[#allocation2] sm:$0xf] %vm1146_vm6, %v1144_v9 }
 0x5fd   : > { %v1261_v10 = vpop.permute.xlu1 %1260 }
 0x5fe   : > { %1264 = vst.msk [vmem:[#allocation2] sm:$0xf] %vm1263_vm7, %v1261_v10 }
 0x605   : > { %v1265_v11 = vld [vmem:[#allocation2] sm:$0xf] }
 0x606   : > { %1879 = vmatmul.mubr.msk.bf16.vlgmr.msra.gmra.mxu0 %vm698_vm0, %v1265_v11 }
 0x607   : > { %1906 = vmatprep.mubr.msk.bf16.mxu0 %vm2089_vm1, %v2088_v8  ;;  %1891 = vmatpush3.bf16.msra.mxu0 %v1980_v42 }
 0x608   : > { %1892 = vmatprep.subr.bf16.mxu0 %v2088_v8 }
 0x60b   : > { %1893 = vmatpush3.bf16.msra.mxu0 %v1981_v14 }
 0x60c   : > { %1894 = vmatprep.subr.bf16.mxu0 %v2088_v8 }
 0x60f   : > { %1895 = vmatpush3.bf16.msra.mxu0 %v1982_v17 }
 0x610   : > { %1896 = vmatprep.subr.bf16.mxu0 %v2088_v8 }
 0x613   : > { %1897 = vmatpush3.bf16.msra.mxu0 %v1983_v43 }
 0x614   : > { %1898 = vmatprep.subr.bf16.mxu0 %v2088_v8 }
 0x617   : > { %1899 = vmatpush3.bf16.msra.mxu0 %v1984_v44 }
 0x618   : > { %1900 = vmatprep.subr.bf16.mxu0 %v2088_v8 }
 0x61b   : > { %1901 = vmatpush3.bf16.msra.mxu0 %v1985_v45 }
 0x61c   : > { %1902 = vmatprep.subr.bf16.mxu0 %v2088_v8 }
 0x61f   : > { %1903 = vmatpush3.bf16.msra.mxu0 %v1986_v46 }
 0x620   : > { %1904 = vmatprep.subr.bf16.mxu0 %v2088_v8 }
 0x623   : > { %1905 = vmatpush3.bf16.msra.mxu0 %v1987_v47 }
 0x6c6   : > { %v1326_v15 = vpop.f32.mrf.mxu0 }
 0x6c7   : > { %v1327_v16 = vadd.f32 %v1756_v12, %v1326_v15 }
 0x6c8   : > { %v1880_v18 = vpop.f32.mrf.mxu0 }
 0x6c9   : > { %v1338_v19 = vmul.f32 %v1760_v13, %v1327_v16 }
 0x6ca   : > { %v1329_v20 = vpop.f32.mrf.mxu0 }
 0x6cb   : > { %v2376_v21 = vadd.f32 %v1338_v19, %v2250_v0  ;;  %v1978_v0 = vld [vmem:[%s2501_s13 + $0x8] sm:$0xff]  }
 0x6cc   : > { %v1881_v22 = vpop.f32.mrf.mxu0  ;;  %1883 = vmatpush3.bf16.msra.mxu1 %v1978_v0 }
 0x6cd   : > { %v1340_v23 = vsel %vm698_vm0, %v2376_v21, 0.0  ;;  %1884 = vmatprep.subr.bf16.mxu1 %v2088_v8 }
 0x6ce   : > { %1341 = vadd.xlane.f32.xlu0 %v1340_v23 }
 0x6d0   : > { %1885 = vmatpush3.bf16.msra.mxu1 %v1979_v29 }
 0x757   : > { %v1342_v24 = vpop.xlane.xlu0 %1341 }
 0x758   : > { %v1343_v25 = vmul.f32 0.03125, %v1342_v24 }
 0x75a   : > { %v1344_v26 = vsub.f32 %v2376_v21, %v1343_v25 }
 0x75c   : > { %v1345_v27 = vmul.f32 %v1344_v26, %v1344_v26 }
 0x75e   : > { %v1346_v28 = vsel %vm698_vm0, %v1345_v27, 0.0 }
 0x75f   : > { %1347 = vadd.xlane.f32.xlu1 %v1346_v28 }
 0x7e8   : > { %v1348_v30 = vpop.xlane.xlu1 %1347 }
 0x7e9   : > { %v1349_v31 = vmul.f32 0.03125, %v1348_v30 }
 0x7eb   : > { %v1350_v32 = vadd.f32 1e-06, %v1349_v31 }
 0x7ed   : > { %2006 = vrsqrt.f32 %v1350_v32 }
 0x7fa   : > { %v2007_v36 = vpop.eup %2006 }
 0x7fb   : > { %v1352_v37 = vmul.f32 %v2007_v36, %v1344_v26 }
 0x7fd   : > { %v1360_v39 = vmul.f32 %v1358_v35, %v1352_v37 }
 0x7ff   : > { %v1367_v40 = vadd.f32 %v1761_v38, %v1360_v39 }
 0x801   : > { %v1368_v41 = vpack.c.bf16 %v1367_v40, %v1367_v40 }
 0x803   : > { %1887 = vmatmul.mubr.msk.bf16.vlgmr.msra.gmra.mxu1 %vm698_vm0, %v1368_v41 }
 0x8c3   : > { %v1429_v49 = vpop.f32.mrf.mxu1 }
 0x8c4   : > { %v1430_v50 = vadd.f32 %v1762_v48, %v1429_v49 }
 0x8c5   : > { %v1888_v51 = vpop.f32.mrf.mxu1 }
 0x8c6   : > { %v1436_v52 = vmul.f32 0.044715, %v1430_v50  ;;  %v1435_v59 = vmul.f32 0.5, %v1430_v50 }
 0x8c7   : > { %v1432_v53 = vpop.f32.mrf.mxu1 }
 0x8c8   : > { %v1437_v54 = vmul.f32 %v1436_v52, %v1430_v50 }
 0x8c9   : > { %v1889_v55 = vpop.f32.mrf.mxu1 }
 0x8ca   : > { %v1438_v56 = vmul.f32 %v1437_v54, %v1430_v50 }
 0x8cc   : > { %v1439_v57 = vadd.f32 %v1438_v56, %v1430_v50 }
 0x8ce   : > { %v1440_v58 = vmul.f32 0.7978846, %v1439_v57 }
 0x8d0   : > { %2008 = vtanh.f32 %v1440_v58 }
 0x8dd   : > { %v2009_v8 = vpop.eup %2008 }
 0x8de   : > { %v1442_v60 = vadd.f32 1.0, %v2009_v8 }
 0x8e0   : > { %v1443_v61 = vmul.f32 %v1442_v60, %v1435_v59 }
 0x8e2   : > { %v1444_v62 = vpack.c.bf16 %v1443_v61, %v1443_v61 }
 0x8e4   : > { %1907 = vmatmul.mubr.bf16.vlgmr.msra.gmra.mxu0 %v1444_v62 }
 0x9a4   : > { %v1550_v2 = vpop.f32.mrf.mxu0 }
 0x9a5   : > { %v1551_v3 = vadd.f32 %v1766_v63, %v1550_v2 }
 0x9a6   : > { %v1908_v4 = vpop.f32.mrf.mxu0 }
 0x9a7   : > { %v1562_v5 = vmul.f32 %v1775_v1, %v1551_v3 }
 0x9a8   : > { %v1553_v6 = vpop.f32.mrf.mxu0 }
 0x9a9   : > { %v1563_v7 = vadd.f32 %v1562_v5, %v2376_v21 }
 0x9aa   : > { %v1909_v9 = vpop.f32.mrf.mxu0 }
 0x9ab   : > { %1564 = vst.msk [vmem:[%s655_s3] sm:$0xff] %vm698_vm0, %v1563_v7 }
 0x9ac   : > { %2023 = shalt.err (!%p2020_p5)
}
 0x9ad   : > { %s2024_s3 = scalar_lea.hbm %s2447_s23, 128  ;;  %s2028_s30 = scalar_lea.hbm %s2505_s17, 256 }
 0x9ae   : > { %p2025_p6 = scmp.ne.s32.totalorder %s2447_s23, %s2024_s3  ;;  %p2029_p10 = scmp.lt.s32.totalorder %s2447_s23, %s2505_s17 }
 0x9af   : > { %p2030_p11 = scmp.lt.s32.totalorder %s2028_s30, %s2024_s3 }
 0x9b0   : > { %p2026_p7 = pnand %p2025_p6, %p2227_p4 }
 0x9b1   : > { %p2031_p12 = por %p2030_p11, %p2029_p10 }
 0x9b2   : > { %p2027_p9 = pneg %p2026_p7 }
 0x9b4   : > { %p2032_p13 = pnand %p2031_p12, %p2027_p9 }
 0x9b6   : > { %2035 = shalt.err (!%p2032_p13)
}
 0x9b7   : > { %1910 = dma.vmem_to_hbm [thread:$0]  (%p2227_p4), %s1581_s4, 128, %s2447_s23, %s1566_s19  }
 0x9b8 PF: > { %p1916_p0 = scmp.ge.s32.totalorder %s2086_s29, 2  ;;  %s1592_s0 = sand.u32 1, %s2066_s24  }
 0x9b9   : > { %s1593_s2 = scalar_lea.sflag [#allocation4], %s1592_s0 }
 0x9ba   : > { %p1913_p1 = pnand %p1916_p0, %p2234_p8 }
 0x9bc   : > { %p1914_p2 = pneg %p1913_p1 }
 0x9be   : > { %2061 = dma.done.wait (%p1914_p2), %s1593_s2, 128  }
 0x9bf   : > { %2063 = vsyncadd (%p1914_p2), %s1593_s2, 4294967168  ;;  %s30_s29 = sadd.s32 1, %s2086_s29   ;;  %s2527_s1 = sld [smem:[#allocation8_spill]] }
 0x9c0   : > { %p27_p3 = scmp.ge.s32.totalorder %s30_s29, 4   ;;  %s2528_s27 = sld [smem:[#allocation6_spill]] }
 0x9c1   : > { %s2529_s28 = sld [smem:[#allocation7_spill]]  ;;  %s2530_s24 = smov %s2070_s25 }
 0x9c2   : > { %s2531_s25 = smov %s2074_s26  ;;  %29 = sbr.rel (!%p27_p3) target bundleno = 12 (0xc), region = 147 }
 0x9c5   : > { %s2532_s26 = smov %s2527_s1 }
 0x9c7   :  { %1598 = vsyncpa [#allocation4], 1 }
 0x9c8   :  { %1600 = vsyncpa [#allocation4 + $0x1], 1 }

// kernel: tpu_custom_call.1
= control target key start
LH: loop header
LB: loop body
LE: loop exit
PB: predicated region body
PF: predicated region fallthrough
CT: control target
= control target key end

     0   :  { %s2488_s0 = inlined_call_operand.vmem [shape: f32[2,8,32], index: 0, kind: input, shape index: {}]   ;;  %s2489_s1 = inlined_call_operand.vmem [shape: bf16[2,32,8], index: 1, kind: input, shape index: {}]   ;;  %s2490_s2 = inlined_call_operand.vmem [shape: bf16[2,8,32], index: 2, kind: input, shape index: {}]   ;;  %s2491_s3 = inlined_call_operand.vmem [shape: f32[2,1,32], index: 3, kind: input, shape index: {}]   ;;  %s2492_s4 = inlined_call_operand.vmem [shape: f32[2,1,32], index: 4, kind: input, shape index: {}]   ;;  %s2493_s5 = inlined_call_operand.vmem [shape: f32[2,1,32], index: 5, kind: input, shape index: {}]   ;;  %s2494_s6 = inlined_call_operand.vmem [shape: f32[2,1,32], index: 6, kind: input, shape index: {}]   ;;  %s2495_s7 = inlined_call_operand.vmem [shape: f32[2,1,32], index: 7, kind: input, shape index: {}]   ;;  %s2496_s8 = inlined_call_operand.vmem [shape: f32[2,1,32], index: 8, kind: input, shape index: {}]   ;;  %s2497_s9 = inlined_call_operand.vmem [shape: bf16[32,32], index: 9, kind: input, shape index: {}]   ;;  %s2498_s10 = inlined_call_operand.vmem [shape: f32[1,32], index: 10, kind: input, shape index: {}]   ;;  %s2499_s11 = inlined_call_operand.vmem [shape: bf16[32,32], index: 11, kind: input, shape index: {}]   ;;  %s2500_s12 = inlined_call_operand.vmem [shape: f32[1,32], index: 12, kind: input, shape index: {}]   ;;  %s2501_s13 = inlined_call_operand.vmem [shape: bf16[32,128], index: 13, kind: input, shape index: {}]   ;;  %s2502_s14 = inlined_call_operand.vmem [shape: f32[1,128], index: 14, kind: input, shape index: {}]   ;;  %s2503_s15 = inlined_call_operand.vmem [shape: bf16[128,32], index: 15, kind: input, shape index: {}]   ;;  %s2504_s16 = inlined_call_operand.vmem [shape: f32[1,32], index: 16, kind: input, shape index: {}]   ;;  %s2505_s17 = inlined_call_operand.hbm [shape: f32[2,8,32], index: 17, kind: output, shape index: {}]  }
   0x1   :  { %2508 = sst [smem:[#allocation9_spill]] %s2488_s0 }
   0x2   :  { %2509 = sst [smem:[#allocation10_spill]] %s2489_s1 }
   0x3   :  { %2510 = sst [smem:[#allocation11_spill]] %s2490_s2 }
   0x4   :  { %2511 = sst [smem:[#allocation12_spill]] %s2491_s3 }
   0x5   :  { %2512 = sst [smem:[#allocation13_spill]] %s2492_s4 }
   0x6   :  { %2513 = sst [smem:[#allocation14_spill]] %s2493_s5 }
   0x7   :  { %2514 = sst [smem:[#allocation15_spill]] %s2494_s6 }
   0x8   :  { %22 = vsyncpa [#allocation4], 0 }
   0x9   :  { %24 = vsyncpa [#allocation4 + $0x1], 0  ;;  %s2187_s24 = smov 0   ;;  %s2189_s25 = smov 0  }
   0xa   :  { %s2191_s26 = smov 0   ;;  %s2193_s27 = smov 0  }
   0xb   :  { %s2195_s28 = smov 0   ;;  %s2197_s29 = smov 0  }
   0xc LB: > { %2515 = sst [smem:[#allocation6_spill]] %s2082_s28  ;;  %s1729_s0 = sadd.s32 4294967295, %s2086_s29   ;;  %s2086_s29 = sphi %s2197_s29, %s30_s29   ;;  %s2082_s28 = sphi %s2195_s28, %s2529_s28   ;;  %s2078_s27 = sphi %s2193_s27, %s2528_s27   ;;  %s2074_s26 = sphi %s2191_s26, %s2532_s26   ;;  %s2070_s25 = sphi %s2189_s25, %s2531_s25   ;;  %s2066_s24 = sphi %s2187_s24, %s2530_s24  }
   0xd   : > { %s1730_s30 = sadd.s32 4294967294, %s2086_s29   ;;  %s42_s18 = sadd.s32 1, %s2082_s28 }
   0xe   : > { %s455_s19 = sadd.s32 1, %s2074_s26  ;;  %p44_p0 = scmp.ge.s32.totalorder %s42_s18, 2 }
   0xf   : > { %p465_p1 = scmp.ne.s32.totalorder %s2074_s26, %s2070_s25  ;;  %p466_p2 = scmp.eq.s32.totalorder %s1729_s0, 1 }
  0x10   : > { %p471_p3 = scmp.ne.s32.totalorder %s2070_s25, %s2066_s24  ;;  %s2534_s18 = smov (%p44_p0, %s42_s18), 0 }
  0x11   : > { %2516 = sst [smem:[#allocation7_spill]] %s2534_s18  ;;  %p2227_p4 = por %p466_p2, %p465_p1 }
  0x12   : > { %p472_p5 = scmp.eq.s32.totalorder %s1730_s30, 1  ;;  %s450_s20 = ssub.s32 %s2082_s28, %s2534_s18 }
  0x13   : > { %p1733_p6 = scmp.ge.s32.totalorder %s2086_s29, 1  ;;  %p453_p7 = scmp.eq.s32.totalorder %s450_s20, 0 }
  0x14   : > { %p2234_p8 = por %p472_p5, %p471_p3  ;;  %p575_p9 = scmp.lt.s32.totalorder %s2086_s29, 3 }
  0x15   : > { %s2240_s22 = scalar_select %p453_p7, %s2074_s26, %s455_s19  }
  0x16   : > { %p576_p10 = pnand %p1733_p6, %p575_p9 }
  0x17   : > { %2519 = sst [smem:[#allocation8_spill]] %s2240_s22  ;;  %p656_p11 = scmp.lt.s32.totalorder (!%p576_p10), %s2078_s27, 1 }
  0x18   : > { %579 = sbr.rel (%p576_p10) target bundleno = 2488 (0x9b8), region = 88  ;;  %s2520_s20 = sld [smem:[#allocation9_spill]] (!%p576_p10) }
  0x19   : > { %s2521_s4 = sld [smem:[#allocation13_spill]] (!%p576_p10)  ;;  %s2091_s22 = smov (!%p576_p10), 120  }
  0x1a   : > { %s2522_s3 = sld [smem:[#allocation12_spill]] (!%p576_p10)  ;;  %s2094_s19 = smov (!%p576_p10), 16  }
  0x1b   : > { %s2524_s2 = sld [smem:[#allocation11_spill]] (!%p576_p10) }
  0x1c   : > { %s2525_s5 = sld [smem:[#allocation14_spill]] (!%p576_p10) }
  0x1d   : > { %s2244_s23 = scalar_select %p656_p11, %s2078_s27, 1  ;;  %vm698_vm0 = vcmask 261120   ;;  %v1973_v7 = vld [vmem:[%s2497_s9 + $0x8] sm:$0xff]   ;;  %v2088_v8 = vmov 0.0   ;;  %vm2089_vm1 = vmmov 0   ;;  %v1974_v9 = vld [vmem:[%s2497_s9] sm:$0xff]   ;;  %v715_v13 = vlaneseq }
  0x1e   : > { %1818 = vmatprep.subr.bf16.mxu1 %v2088_v8  ;;  %1822 = vmatprep.mubr.msk.bf16.mxu1 %vm2089_vm1, %v2088_v8  ;;  %vm805_vm2 = vcmask 1043456   ;;  %v1740_v29 = vld [vmem:[%s2498_s10] ss:$0 sm:$0xff]  ;;  %vm801_vm3 = vcmask 64512   ;;  %vm908_vm4 = vcmask 60416   ;;  %vm1029_vm5 = vcmask 126016  }
  0x1f   : > { %s1735_s0 = sshll.u32 %s2244_s23, 3  ;;  %1819 = vmatpush3.bf16.msra.mxu1 %v1973_v7  ;;  %1838 = vmatprep.subr.bf16.mxu0 %v2088_v8  ;;  %s677_s30 = scalar_lea.vmem %s2521_s4, %s2244_s23  ;;  %v2274_v14 = vshrl.u32 %v715_v13, 7  ;;  %vm1146_vm6 = vcmask 191616   ;;  %vm1263_vm7 = vcmask 257216  }
  0x20   : > { %s662_s28 = scalar_lea.vmem %s2520_s20, %s1735_s0  ;;  %1820 = vmatprep.subr.bf16.mxu1 %v2088_v8  ;;  %1840 = vmatprep.mubr.msk.bf16.mxu0 %vm2089_vm1, %v2088_v8  ;;  %v693_v15 = vld [vmem:[%s677_s30] sm:$0x1]  ;;  %s1780_s18 = sshll.u32 %s2244_s23, 4 }
  0x21   : > { %v2250_v0 = vld [vmem:[%s662_s28] sm:$0xff]  ;;  %v713_v16 = vadd.f32 1.0, %v693_v15  ;;  %v717_v17 = vsub.s32 0, %v2274_v14  ;;  %s674_s28 = scalar_lea.vmem %s2522_s3, %s2244_s23  ;;  %s2523_s30 = sld [smem:[#allocation10_spill]]  ;;  %v1981_v14 = vld [vmem:[%s2503_s15 + $0x30] sm:$0xff]  }
  0x22   : > { %v699_v1 = vsel %vm698_vm0, %v2250_v0, 0.0  ;;  %v1739_v21 = vld [vmem:[%s674_s28] ss:$0 sm:$0xff]  ;;  %s2092_s0 = smov 112   ;;  %s2526_s6 = sld [smem:[#allocation15_spill]] }
  0x23   : > { %700 = vadd.xlane.f32.xlu0 %v699_v1  ;;  %1821 = vmatpush3.bf16.msra.mxu1 %v1974_v9  ;;  %v718_v18 = vrot.slane %v713_v16, %v717_v17 }
  0x24   : > { %1826 = vmatprep.subr.bf16.mxu1 %v2088_v8 }
  0x27   : > { %s2290_s20 = scalar_lea.vmem %s2523_s30, %s1780_s18  ;;  %s2090_s18 = smov 104  }
  0x28   : > { %v796_v25 = vld [vmem:[%s2290_s20] sm:$0xf]  ;;  %v797_v27 = vld [vmem:[%s2290_s20 + $0x4] sm:$0xf]  ;;  %v798_v36 = vld [vmem:[%s2290_s20 + $0x8] sm:$0xf] }
  0x29   : > { %v807_v26 = vsel %vm805_vm2, %v796_v25, 0  ;;  %v917_v28 = vsel %vm805_vm2, %v797_v27, 0  ;;  %v1037_v37 = vsel %vm805_vm2, %v798_v36, 0  ;;  %v799_v39 = vld [vmem:[%s2290_s20 + $0xc] sm:$0xf]  ;;  %s1738_s30 = sshll.u32 %s2244_s23, 2  ;;  %s686_s20 = scalar_lea.vmem %s2495_s7, %s2244_s23 }
  0x2a   : > { %1839 = vmatpush3.bf16.msra.mxu0 %v917_v28  ;;  %v1154_v40 = vsel %vm805_vm2, %v799_v39, 0  ;;  %s671_s28 = scalar_lea.vmem %s2524_s2, %s1738_s30  ;;  %s653_s30 = sand.u32 1, %s2070_s25  }
  0x2b   : > { %1850 = vmatprep.subr.bf16.mxu0 %v2088_v8 }
  0xac   : > { %v701_v2 = vpop.xlane.xlu0 %700 }
  0xad   : > { %v703_v3 = vmul.f32 0.03125, %v701_v2 }
  0xaf   : > { %v704_v4 = vsub.f32 %v2250_v0, %v703_v3 }
  0xb1   : > { %v705_v5 = vmul.f32 %v704_v4, %v704_v4 }
  0xb3   : > { %v706_v6 = vsel %vm698_vm0, %v705_v5, 0.0  ;;  %v800_v5 = vld [vmem:[%s671_s28] sm:$0xf]  ;;  %s2095_s28 = smov 24  }
  0xb4   : > { %707 = vadd.xlane.f32.xlu0 %v706_v6  ;;  %v865_v6 = vsel %vm805_vm2, %v800_v5, 0 }
 0x13d   : > { %v708_v10 = vpop.xlane.xlu0 %707 }
 0x13e   : > { %v709_v11 = vmul.f32 0.03125, %v708_v10 }
 0x140   : > { %v710_v12 = vadd.f32 1e-06, %v709_v11 }
 0x142   : > { %1988 = vrsqrt.f32 %v710_v12 }
 0x14f   : > { %v1989_v19 = vpop.eup %1988 }
 0x150   : > { %v712_v20 = vmul.f32 %v1989_v19, %v704_v4  ;;  %v1747_v19 = vcombine.low %v800_v5, %v800_v5 }
 0x152   : > { %v720_v22 = vmul.f32 %v718_v18, %v712_v20 }
 0x154   : > { %v727_v23 = vadd.f32 %v1739_v21, %v720_v22 }
 0x156   : > { %v728_v24 = vpack.c.bf16 %v727_v23, %v727_v23 }
 0x158   : > { %1823 = vmatmul.mubr.msk.bf16.vlgmr.msra.gmra.mxu1 %vm698_vm0, %v728_v24 }
 0x159   : > { %1828 = vmatprep.mubr.msk.bf16.mxu1 %vm2089_vm1, %v2088_v8  ;;  %1827 = vmatpush3.bf16.msra.mxu1 %v807_v26 }
 0x15a   : > { %1832 = vmatprep.subr.bf16.mxu1 %v2088_v8 }
 0x218   : > { %v789_v30 = vpop.f32.mrf.mxu1 }
 0x219   : > { %v790_v31 = vadd.f32 %v1740_v29, %v789_v30 }
 0x21a   : > { %v1824_v32 = vpop.f32.mrf.mxu1 }
 0x21b   : > { %v795_v33 = vpack.c.bf16 %v790_v31, %v790_v31 }
 0x21c   : > { %v792_v34 = vpop.f32.mrf.mxu1 }
 0x21d   : > { %1148 = vrot.lane.b32.xlu0 %v795_v33, %s2090_s18  ;;  %911 = vrot.lane.b32.xlu1 %v795_v33, %s2091_s22 }
 0x21e   : > { %1829 = vmatmul.mubr.msk.bf16.vlgmr.msra.gmra.mxu1 %vm801_vm3, %v795_v33  ;;  %v1825_v35 = vpop.f32.mrf.mxu1 }
 0x21f   : > { %1834 = vmatprep.mubr.msk.bf16.mxu1 %vm2089_vm1, %v2088_v8  ;;  %1833 = vmatpush3.bf16.msra.mxu1 %v865_v6 }
 0x220   : > { %1844 = vmatprep.subr.bf16.mxu1 %v2088_v8 }
 0x221   : > { %1031 = vrot.lane.b32.xlu1 %v795_v33, %s2092_s0 }
 0x28f   : > { %v912_v38 = vpop.permute.xlu1 %911  ;;  %v1149_v42 = vpop.permute.xlu0 %1148 }
 0x290   : > { %1841 = vmatmul.mubr.msk.bf16.vlgmr.msra.gmra.mxu0 %vm801_vm3, %v912_v38 }
 0x291   : > { %1851 = vmatpush3.bf16.msra.mxu0 %v1037_v37  ;;  %1852 = vmatprep.mubr.msk.bf16.mxu0 %vm2089_vm1, %v2088_v8 }
 0x292   : > { %1862 = vmatprep.subr.bf16.mxu0 %v2088_v8 }
 0x293   : > { %v1032_v41 = vpop.permute.xlu1 %1031 }
 0x298   : > { %1853 = vmatmul.mubr.msk.bf16.vlgmr.msra.gmra.mxu0 %vm801_vm3, %v1032_v41 }
 0x299   : > { %1863 = vmatpush3.bf16.msra.mxu0 %v1154_v40  ;;  %1864 = vmatprep.mubr.msk.bf16.mxu0 %vm2089_vm1, %v2088_v8 }
 0x29a   : > { %1874 = vmatprep.subr.bf16.mxu0 %v2088_v8 }
 0x2a0   : > { %1865 = vmatmul.mubr.msk.bf16.vlgmr.msra.gmra.mxu0 %vm801_vm3, %v1149_v42 }
 0x2a1   : > { %1878 = vmatprep.mubr.msk.bf16.mxu0 %vm2089_vm1, %v2088_v8 }
 0x2de   : > { %v843_v43 = vpop.f32.mrf.mxu1 }
 0x2df   : > { %v849_v44 = vsel %vm801_vm3, %v843_v43, -inf }
 0x2e0   : > { %850 = vmax.xlane.f32.xlu1 %v849_v44  ;;  %v1830_v45 = vpop.f32.mrf.mxu1 }
 0x2e2   : > { %v846_v46 = vpop.f32.mrf.mxu1 }
 0x2e4   : > { %v1831_v47 = vpop.f32.mrf.mxu1 }
 0x350   : > { %v953_v48 = vpop.f32.mrf.mxu0 }
 0x351   : > { %v959_v49 = vsel %vm801_vm3, %v953_v48, -inf }
 0x352   : > { %960 = vmax.xlane.f32.xlu0 %v959_v49  ;;  %v1842_v50 = vpop.f32.mrf.mxu0 }
 0x354   : > { %v956_v51 = vpop.f32.mrf.mxu0 }
 0x356   : > { %v1843_v52 = vpop.f32.mrf.mxu0 }
 0x358   : > { %v1073_v53 = vpop.f32.mrf.mxu0 }
 0x359   : > { %v1079_v54 = vsel %vm801_vm3, %v1073_v53, -inf }
 0x35a   : > { %v1854_v55 = vpop.f32.mrf.mxu0  ;;  %1080 = vmax.xlane.f32.xlu1 %v1079_v54 }
 0x35c   : > { %v1076_v56 = vpop.f32.mrf.mxu0 }
 0x35e   : > { %v1855_v57 = vpop.f32.mrf.mxu0 }
 0x360   : > { %v1190_v58 = vpop.f32.mrf.mxu0 }
 0x361   : > { %v1196_v59 = vsel %vm801_vm3, %v1190_v58, -inf }
 0x362   : > { %v1866_v60 = vpop.f32.mrf.mxu0  ;;  %1197 = vmax.xlane.f32.xlu1 %v1196_v59 }
 0x363   : > { %v1977_v60 = vld [vmem:[%s2499_s11] sm:$0xff]  }
 0x364   : > { %v1193_v61 = vpop.f32.mrf.mxu0 }
 0x366   : > { %v1867_v62 = vpop.f32.mrf.mxu0 }
 0x369   : > { %v851_v63 = vpop.xlane.xlu1 %850 }
 0x36a   : > { %v852_v1 = vsub.f32 %v843_v43, %v851_v63 }
 0x36c   : > { %v853_v2 = vmul.f32 1.442695, %v852_v1 }
 0x36e   : > { %1990 = vpow2.f32 %v853_v2 }
 0x37b   : > { %v1991_v3 = vpop.eup %1990 }
 0x37c   : > { %v855_v4 = vsel %vm801_vm3, %v1991_v3, 0.0 }
 0x37d   : > { %856 = vadd.xlane.f32.xlu1 %v855_v4 }
 0x3db   : > { %v961_v7 = vpop.xlane.xlu0 %960 }
 0x3dc   : > { %v962_v9 = vsub.f32 %v953_v48, %v961_v7 }
 0x3de   : > { %v963_v10 = vmul.f32 1.442695, %v962_v9 }
 0x3e0   : > { %1992 = vpow2.f32 %v963_v10 }
 0x3e3   : > { %v1081_v11 = vpop.xlane.xlu1 %1080 }
 0x3e4   : > { %v1082_v23 = vsub.f32 %v1073_v53, %v1081_v11 }
 0x3e6   : > { %v1083_v24 = vmul.f32 1.442695, %v1082_v23 }
 0x3eb   : > { %v1198_v12 = vpop.xlane.xlu1 %1197 }
 0x3ec   : > { %v1199_v13 = vsub.f32 %v1190_v58, %v1198_v12  ;;  %v1976_v58 = vld [vmem:[%s2499_s11 + $0x8] sm:$0xff]   ;;  %v1756_v12 = vld [vmem:[%s2500_s12] ss:$0 sm:$0xff] }
 0x3ed   : > { %v1993_v15 = vpop.eup %1992  ;;  %1875 = vmatpush3.bf16.msra.mxu0 %v1976_v58 }
 0x3ee   : > { %v1200_v16 = vmul.f32 1.442695, %v1199_v13  ;;  %v965_v18 = vsel %vm801_vm3, %v1993_v15, 0.0  ;;  %1876 = vmatprep.subr.bf16.mxu0 %v2088_v8 }
 0x3ef   : > { %966 = vadd.xlane.f32.xlu1 %v965_v18 }
 0x3f0   : > { %1994 = vpow2.f32 %v1200_v16 }
 0x3f1   : > { %1877 = vmatpush3.bf16.msra.mxu0 %v1977_v60 }
 0x3f2   : > { %1890 = vmatprep.subr.bf16.mxu0 %v2088_v8 }
 0x3fd   : > { %v1995_v20 = vpop.eup %1994 }
 0x3fe   : > { %v1202_v21 = vsel %vm801_vm3, %v1995_v20, 0.0 }
 0x3ff   : > { %1203 = vadd.xlane.f32.xlu0 %v1202_v21 }
 0x400   : > { %974 = vrot.lane.b32.xlu1 %v1747_v19, %s2091_s22 }
 0x406   : > { %v857_v22 = vpop.xlane.xlu1 %856 }
 0x407   : > { %1996 = vrcp.f32 %v857_v22 }
 0x408   : > { %1998 = vpow2.f32 %v1083_v24 }
 0x414   : > { %v1997_v25 = vpop.eup %1996 }
 0x415   : > { %v859_v26 = vmul.f32 %v1997_v25, %v1991_v3  ;;  %1091 = vrot.lane.b32.xlu0 %v1747_v19, %s2092_s0  ;;  %v1999_v28 = vpop.eup %1998  ;;  %s680_s0 = scalar_lea.vmem %s2525_s5, %s2244_s23 }
 0x416   : > { %v1085_v29 = vsel %vm801_vm3, %v1999_v28, 0.0  ;;  %v1760_v13 = vld [vmem:[%s680_s0] ss:$0 sm:$0xff]  ;;  %s1777_s0 = sshll.u32 %s2078_s27, 7  ;;  %s2096_s27 = smov [#allocation3]  }
 0x417   : > { %v860_v27 = vpack.c.bf16 %v859_v26, %v859_v26 }
 0x419   : > { %1835 = vmatmul.mubr.msk.bf16.vlgmr.msra.gmra.mxu1 %vm801_vm3, %v860_v27 }
 0x41a   : > { %1846 = vmatprep.mubr.msk.bf16.mxu1 %vm2089_vm1, %v2088_v8 }
 0x424   : > { %1086 = vadd.xlane.f32.xlu1 %v1085_v29  ;;  %v1979_v29 = vld [vmem:[%s2501_s13] sm:$0xff]  }
 0x435   : > { %1208 = vrot.lane.b32.xlu1 %v1747_v19, %s2090_s18  ;;  %s2093_s18 = smov 8  }
 0x478   : > { %v967_v30 = vpop.xlane.xlu1 %966 }
 0x479   : > { %2000 = vrcp.f32 %v967_v30 }
 0x47c   : > { %v975_v31 = vpop.permute.xlu1 %974 }
 0x47d   : > { %v980_v32 = vsel %vm805_vm2, %v975_v31, 0 }
 0x47e   : > { %1845 = vmatpush3.bf16.msra.mxu1 %v980_v32 }
 0x47f   : > { %1856 = vmatprep.subr.bf16.mxu1 %v2088_v8 }
 0x486   : > { %v2001_v33 = vpop.eup %2000 }
 0x487   : > { %v969_v34 = vmul.f32 %v2001_v33, %v1993_v15  ;;  %v696_v33 = vld [vmem:[%s686_s20] sm:$0x1]  ;;  %s1734_s20 = sshll.u32 %s653_s30, 3 }
 0x488   : > { %v1204_v35 = vpop.xlane.xlu0 %1203  ;;  %s655_s3 = scalar_lea.vmem [#allocation3], %s1734_s20  ;;  %s2014_s20 = sshll.u32 %s2096_s27, 4  ;;  %s2015_s20 = int_to_ptr.vmem [resolvable:$false] %s2014_s20 }
 0x489   : > { %v970_v36 = vpack.c.bf16 %v969_v34, %v969_v34  ;;  %v1353_v34 = vadd.f32 1.0, %v696_v33  ;;  %s1580_s4 = sshll.u32 %s655_s3, 4  ;;  %s1581_s4 = int_to_ptr.vmem [resolvable:$true] %s1580_s4 }
 0x48a   : > { %s2010_s2 = scalar_lea.vmem %s1581_s4, 128  ;;  %p2017_p1 = scmp.lt.s32.totalorder %s1581_s4, %s2015_s20 }
 0x48b   : > { %1847 = vmatmul.mubr.msk.bf16.vlgmr.msra.gmra.mxu1 %vm801_vm3, %v970_v36  ;;  %p2011_p12 = scmp.ne.s32.totalorder %s1581_s4, %s2010_s2 }
 0x48c   : > { %v1092_v37 = vpop.permute.xlu0 %1091  ;;  %1858 = vmatprep.mubr.msk.bf16.mxu1 %vm2089_vm1, %v2088_v8 }
 0x48d   : > { %v1097_v38 = vsel %vm805_vm2, %v1092_v37, 0  ;;  %p2012_p13 = pnand %p2011_p12, %p2227_p4 }
 0x48e   : > { %1857 = vmatpush3.bf16.msra.mxu1 %v1097_v38 }
 0x48f   : > { %1868 = vmatprep.subr.bf16.mxu1 %v2088_v8  ;;  %p2013_p0 = pneg %p2012_p13 }
 0x4ad   : > { %v1087_v39 = vpop.xlane.xlu1 %1086 }
 0x4ae   : > { %2002 = vrcp.f32 %v1087_v39 }
 0x4af   : > { %2004 = vrcp.f32 %v1204_v35  ;;  %v1358_v35 = vrot.slane %v1353_v34, %v717_v17  ;;  %v1982_v17 = vld [vmem:[%s2503_s15 + $0x28] sm:$0xff]  }
 0x4b1   : > { %v1209_v41 = vpop.permute.xlu1 %1208 }
 0x4b2   : > { %v1214_v43 = vsel %vm805_vm2, %v1209_v41, 0 }
 0x4bb   : > { %v2003_v40 = vpop.eup %2002 }
 0x4bc   : > { %v1089_v42 = vmul.f32 %v2003_v40, %v1999_v28  ;;  %v2005_v45 = vpop.eup %2004 }
 0x4bd   : > { %v1206_v46 = vmul.f32 %v2005_v45, %v1995_v20  ;;  %v1985_v45 = vld [vmem:[%s2503_s15 + $0x10] sm:$0xff]  }
 0x4be   : > { %v1090_v44 = vpack.c.bf16 %v1089_v42, %v1089_v42  ;;  %v1980_v42 = vld [vmem:[%s2503_s15 + $0x38] sm:$0xff]  }
 0x4bf   : > { %v1207_v47 = vpack.c.bf16 %v1206_v46, %v1206_v46  ;;  %v1986_v46 = vld [vmem:[%s2503_s15 + $0x8] sm:$0xff]  }
 0x4c0   : > { %1859 = vmatmul.mubr.msk.bf16.vlgmr.msra.gmra.mxu1 %vm801_vm3, %v1090_v44  ;;  %v1984_v44 = vld [vmem:[%s2503_s15 + $0x18] sm:$0xff]  }
 0x4c1   : > { %1869 = vmatpush3.bf16.msra.mxu1 %v1214_v43  ;;  %1870 = vmatprep.mubr.msk.bf16.mxu1 %vm2089_vm1, %v2088_v8  ;;  %v1983_v43 = vld [vmem:[%s2503_s15 + $0x20] sm:$0xff]  }
 0x4c2   : > { %1882 = vmatprep.subr.bf16.mxu1 %v2088_v8 }
 0x4c8   : > { %1871 = vmatmul.mubr.msk.bf16.vlgmr.msra.gmra.mxu1 %vm801_vm3, %v1207_v47  ;;  %v1987_v47 = vld [vmem:[%s2503_s15] sm:$0xff]  }
 0x4c9   : > { %1886 = vmatprep.mubr.msk.bf16.mxu1 %vm2089_vm1, %v2088_v8 }
 0x4d9   : > { %v901_v48 = vpop.f32.mrf.mxu1 }
 0x4da   : > { %v907_v49 = vpack.c.bf16 %v901_v48, %v901_v48  ;;  %v1762_v48 = vld [vmem:[%s2502_s14] ss:$0 sm:$0xff] }
 0x4db   : > { %v1836_v50 = vpop.f32.mrf.mxu1 }
 0x4dc   : > { %909 = vst.msk [vmem:[#allocation2] sm:$0xf] %vm908_vm4, %v907_v49 }
 0x4dd   : > { %v904_v51 = vpop.f32.mrf.mxu1 }
 0x4df   : > { %v1837_v52 = vpop.f32.mrf.mxu1 }
 0x54b   : > { %v1016_v53 = vpop.f32.mrf.mxu1 }
 0x54c   : > { %v1781_v54 = vpack.c.bf16 %v1016_v53, %v1016_v53 }
 0x54d   : > { %v1848_v55 = vpop.f32.mrf.mxu1 }
 0x54e   : > { %1026 = vrot.lane.b32.xlu1 %v1781_v54, %s2093_s18  ;;  %s683_s18 = scalar_lea.vmem %s2526_s6, %s2244_s23 }
 0x54f   : > { %v1019_v56 = vpop.f32.mrf.mxu1  ;;  %v1761_v38 = vld [vmem:[%s683_s18] ss:$0 sm:$0xff] }
 0x551   : > { %v1849_v57 = vpop.f32.mrf.mxu1 }
 0x580   : > { %v1133_v59 = vpop.f32.mrf.mxu1 }
 0x581   : > { %v1782_v61 = vpack.c.bf16 %v1133_v59, %v1133_v59 }
 0x582   : > { %v1860_v62 = vpop.f32.mrf.mxu1 }
 0x583   : > { %1143 = vrot.lane.b32.xlu0 %v1782_v61, %s2094_s19  ;;  %s1566_s19 = scalar_lea.sflag [#allocation4], %s653_s30 }
 0x584   : > { %v1136_v63 = vpop.f32.mrf.mxu1 }
 0x585   : > { %v1766_v63 = vld [vmem:[%s2504_s16] ss:$0 sm:$0xff] }
 0x586   : > { %v1861_v1 = vpop.f32.mrf.mxu1 }
 0x588   : > { %v1250_v2 = vpop.f32.mrf.mxu1 }
 0x589   : > { %v1783_v3 = vpack.c.bf16 %v1250_v2, %v1250_v2 }
 0x58a   : > { %v1872_v4 = vpop.f32.mrf.mxu1 }
 0x58b   : > { %1260 = vrot.lane.b32.xlu1 %v1783_v3, %s2095_s28  ;;  %s689_s28 = scalar_lea.vmem %s2496_s8, %s2244_s23  ;;  %s2447_s23 = scalar_lea.hbm %s2505_s17, %s1777_s0 }
 0x58c   : > { %v1253_v5 = vpop.f32.mrf.mxu1  ;;  %v1775_v1 = vld [vmem:[%s689_s28] ss:$0 sm:$0xff]  ;;  %s2016_s28 = scalar_lea.vmem %s2015_s20, 256 }
 0x58d   : > { %p2018_p2 = scmp.lt.s32.totalorder %s2016_s28, %s2010_s2 }
 0x58e   : > { %v1873_v6 = vpop.f32.mrf.mxu1 }
 0x58f   : > { %p2019_p3 = por %p2018_p2, %p2017_p1 }
 0x591   : > { %p2020_p5 = pnand %p2019_p3, %p2013_p0 }
 0x5c0   : > { %v1027_v7 = vpop.permute.xlu1 %1026 }
 0x5c1   : > { %1030 = vst.msk [vmem:[#allocation2] sm:$0xf] %vm1029_vm5, %v1027_v7 }
 0x5f5   : > { %v1144_v9 = vpop.permute.xlu0 %1143 }
 0x5f6   : > { %1147 = vst.msk [vmem:[#allocation2] sm:$0xf] %vm1146_vm6, %v1144_v9 }
 0x5fd   : > { %v1261_v10 = vpop.permute.xlu1 %1260 }
 0x5fe   : > { %1264 = vst.msk [vmem:[#allocation2] sm:$0xf] %vm1263_vm7, %v1261_v10 }
 0x605   : > { %v1265_v11 = vld [vmem:[#allocation2] sm:$0xf] }
 0x606   : > { %1879 = vmatmul.mubr.msk.bf16.vlgmr.msra.gmra.mxu0 %vm698_vm0, %v1265_v11 }
 0x607   : > { %1906 = vmatprep.mubr.msk.bf16.mxu0 %vm2089_vm1, %v2088_v8  ;;  %1891 = vmatpush3.bf16.msra.mxu0 %v1980_v42 }
 0x608   : > { %1892 = vmatprep.subr.bf16.mxu0 %v2088_v8 }
 0x60b   : > { %1893 = vmatpush3.bf16.msra.mxu0 %v1981_v14 }
 0x60c   : > { %1894 = vmatprep.subr.bf16.mxu0 %v2088_v8 }
 0x60f   : > { %1895 = vmatpush3.bf16.msra.mxu0 %v1982_v17 }
 0x610   : > { %1896 = vmatprep.subr.bf16.mxu0 %v2088_v8 }
 0x613   : > { %1897 = vmatpush3.bf16.msra.mxu0 %v1983_v43 }
 0x614   : > { %1898 = vmatprep.subr.bf16.mxu0 %v2088_v8 }
 0x617   : > { %1899 = vmatpush3.bf16.msra.mxu0 %v1984_v44 }
 0x618   : > { %1900 = vmatprep.subr.bf16.mxu0 %v2088_v8 }
 0x61b   : > { %1901 = vmatpush3.bf16.msra.mxu0 %v1985_v45 }
 0x61c   : > { %1902 = vmatprep.subr.bf16.mxu0 %v2088_v8 }
 0x61f   : > { %1903 = vmatpush3.bf16.msra.mxu0 %v1986_v46 }
 0x620   : > { %1904 = vmatprep.subr.bf16.mxu0 %v2088_v8 }
 0x623   : > { %1905 = vmatpush3.bf16.msra.mxu0 %v1987_v47 }
 0x6c6   : > { %v1326_v15 = vpop.f32.mrf.mxu0 }
 0x6c7   : > { %v1327_v16 = vadd.f32 %v1756_v12, %v1326_v15 }
 0x6c8   : > { %v1880_v18 = vpop.f32.mrf.mxu0 }
 0x6c9   : > { %v1338_v19 = vmul.f32 %v1760_v13, %v1327_v16 }
 0x6ca   : > { %v1329_v20 = vpop.f32.mrf.mxu0 }
 0x6cb   : > { %v2376_v21 = vadd.f32 %v1338_v19, %v2250_v0  ;;  %v1978_v0 = vld [vmem:[%s2501_s13 + $0x8] sm:$0xff]  }
 0x6cc   : > { %v1881_v22 = vpop.f32.mrf.mxu0  ;;  %1883 = vmatpush3.bf16.msra.mxu1 %v1978_v0 }
 0x6cd   : > { %v1340_v23 = vsel %vm698_vm0, %v2376_v21, 0.0  ;;  %1884 = vmatprep.subr.bf16.mxu1 %v2088_v8 }
 0x6ce   : > { %1341 = vadd.xlane.f32.xlu0 %v1340_v23 }
 0x6d0   : > { %1885 = vmatpush3.bf16.msra.mxu1 %v1979_v29 }
 0x757   : > { %v1342_v24 = vpop.xlane.xlu0 %1341 }
 0x758   : > { %v1343_v25 = vmul.f32 0.03125, %v1342_v24 }
 0x75a   : > { %v1344_v26 = vsub.f32 %v2376_v21, %v1343_v25 }
 0x75c   : > { %v1345_v27 = vmul.f32 %v1344_v26, %v1344_v26 }
 0x75e   : > { %v1346_v28 = vsel %vm698_vm0, %v1345_v27, 0.0 }
 0x75f   : > { %1347 = vadd.xlane.f32.xlu1 %v1346_v28 }
 0x7e8   : > { %v1348_v30 = vpop.xlane.xlu1 %1347 }
 0x7e9   : > { %v1349_v31 = vmul.f32 0.03125, %v1348_v30 }
 0x7eb   : > { %v1350_v32 = vadd.f32 1e-06, %v1349_v31 }
 0x7ed   : > { %2006 = vrsqrt.f32 %v1350_v32 }
 0x7fa   : > { %v2007_v36 = vpop.eup %2006 }
 0x7fb   : > { %v1352_v37 = vmul.f32 %v2007_v36, %v1344_v26 }
 0x7fd   : > { %v1360_v39 = vmul.f32 %v1358_v35, %v1352_v37 }
 0x7ff   : > { %v1367_v40 = vadd.f32 %v1761_v38, %v1360_v39 }
 0x801   : > { %v1368_v41 = vpack.c.bf16 %v1367_v40, %v1367_v40 }
 0x803   : > { %1887 = vmatmul.mubr.msk.bf16.vlgmr.msra.gmra.mxu1 %vm698_vm0, %v1368_v41 }
 0x8c3   : > { %v1429_v49 = vpop.f32.mrf.mxu1 }
 0x8c4   : > { %v1430_v50 = vadd.f32 %v1762_v48, %v1429_v49 }
 0x8c5   : > { %v1888_v51 = vpop.f32.mrf.mxu1 }
 0x8c6   : > { %v1436_v52 = vmul.f32 0.044715, %v1430_v50  ;;  %v1435_v59 = vmul.f32 0.5, %v1430_v50 }
 0x8c7   : > { %v1432_v53 = vpop.f32.mrf.mxu1 }
 0x8c8   : > { %v1437_v54 = vmul.f32 %v1436_v52, %v1430_v50 }
 0x8c9   : > { %v1889_v55 = vpop.f32.mrf.mxu1 }
 0x8ca   : > { %v1438_v56 = vmul.f32 %v1437_v54, %v1430_v50 }
 0x8cc   : > { %v1439_v57 = vadd.f32 %v1438_v56, %v1430_v50 }
 0x8ce   : > { %v1440_v58 = vmul.f32 0.7978846, %v1439_v57 }
 0x8d0   : > { %2008 = vtanh.f32 %v1440_v58 }
 0x8dd   : > { %v2009_v8 = vpop.eup %2008 }
 0x8de   : > { %v1442_v60 = vadd.f32 1.0, %v2009_v8 }
 0x8e0   : > { %v1443_v61 = vmul.f32 %v1442_v60, %v1435_v59 }
 0x8e2   : > { %v1444_v62 = vpack.c.bf16 %v1443_v61, %v1443_v61 }
 0x8e4   : > { %1907 = vmatmul.mubr.bf16.vlgmr.msra.gmra.mxu0 %v1444_v62 }
 0x9a4   : > { %v1550_v2 = vpop.f32.mrf.mxu0 }
 0x9a5   : > { %v1551_v3 = vadd.f32 %v1766_v63, %v1550_v2 }
 0x9a6   : > { %v1908_v4 = vpop.f32.mrf.mxu0 }
 0x9a7   : > { %v1562_v5 = vmul.f32 %v1775_v1, %v1551_v3 }
 0x9a8   : > { %v1553_v6 = vpop.f32.mrf.mxu0 }
 0x9a9   : > { %v1563_v7 = vadd.f32 %v1562_v5, %v2376_v21 }
 0x9aa   : > { %v1909_v9 = vpop.f32.mrf.mxu0 }
 0x9ab   : > { %1564 = vst.msk [vmem:[%s655_s3] sm:$0xff] %vm698_vm0, %v1563_v7 }
 0x9ac   : > { %2023 = shalt.err (!%p2020_p5)
}
 0x9ad   : > { %s2024_s3 = scalar_lea.hbm %s2447_s23, 128  ;;  %s2028_s30 = scalar_lea.hbm %s2505_s17, 256 }
 0x9ae   : > { %p2025_p6 = scmp.ne.s32.totalorder %s2447_s23, %s2024_s3  ;;  %p2029_p10 = scmp.lt.s32.totalorder %s2447_s23, %s2505_s17 }
 0x9af   : > { %p2030_p11 = scmp.lt.s32.totalorder %s2028_s30, %s2024_s3 }
 0x9b0   : > { %p2026_p7 = pnand %p2025_p6, %p2227_p4 }
 0x9b1   : > { %p2031_p12 = por %p2030_p11, %p2029_p10 }
 0x9b2   : > { %p2027_p9 = pneg %p2026_p7 }
 0x9b4   : > { %p2032_p13 = pnand %p2031_p12, %p2027_p9 }
 0x9b6   : > { %2035 = shalt.err (!%p2032_p13)
}
 0x9b7   : > { %1910 = dma.vmem_to_hbm [thread:$0]  (%p2227_p4), %s1581_s4, 128, %s2447_s23, %s1566_s19  }
 0x9b8 PF: > { %p1916_p0 = scmp.ge.s32.totalorder %s2086_s29, 2  ;;  %s1592_s0 = sand.u32 1, %s2066_s24  }
 0x9b9   : > { %s1593_s2 = scalar_lea.sflag [#allocation4], %s1592_s0 }
 0x9ba   : > { %p1913_p1 = pnand %p1916_p0, %p2234_p8 }
 0x9bc   : > { %p1914_p2 = pneg %p1913_p1 }
 0x9be   : > { %2061 = dma.done.wait (%p1914_p2), %s1593_s2, 128  }
 0x9bf   : > { %2063 = vsyncadd (%p1914_p2), %s1593_s2, 4294967168  ;;  %s30_s29 = sadd.s32 1, %s2086_s29   ;;  %s2527_s1 = sld [smem:[#allocation8_spill]] }
 0x9c0   : > { %p27_p3 = scmp.ge.s32.totalorder %s30_s29, 4   ;;  %s2528_s27 = sld [smem:[#allocation6_spill]] }
 0x9c1   : > { %s2529_s28 = sld [smem:[#allocation7_spill]]  ;;  %s2530_s24 = smov %s2070_s25 }
 0x9c2   : > { %s2531_s25 = smov %s2074_s26  ;;  %29 = sbr.rel (!%p27_p3) target bundleno = 12 (0xc), region = 147 }
 0x9c5   : > { %s2532_s26 = smov %s2527_s1 }
 0x9c7   :  { %1598 = vsyncpa [#allocation4], 1 }
 0x9c8   :  { %1600 = vsyncpa [#allocation4 + $0x1], 1 }

</bundles_post_ra>
